<compile_context>
chip_gen: v7x
topology: tpu7x:2x2x1
jax: 0.10.0
libtpu: 0.0.40
codegen_flags: <defaults>
</compile_context>

<pallas_src>
import math

import jax
import jax.numpy as jnp
from jax.experimental import pallas as pl
from jax.experimental.pallas import tpu as pltpu

# ----------------------------- config (small synthetic) -----------------------------
NUM_OBJ_CLS = 16      # MODEL.ROI_BOX_HEAD.NUM_CLASSES
NUM_REL_CLS = 8       # MODEL.ROI_RELATION_HEAD.NUM_CLASSES
HIDDEN_DIM = 32       # MODEL.ROI_RELATION_HEAD.CONTEXT_HIDDEN_DIM
POOLING_DIM = 64      # MODEL.ROI_RELATION_HEAD.CONTEXT_POOLING_DIM
MLP_HEAD_DIM = 32     # MODEL.ROI_BOX_HEAD.MLP_HEAD_DIM (!= POOLING_DIM -> up_dim used)
IN_CHANNELS = 64
NUM_ITER = 3          # IMPContext default number of message-passing iterations
CLS_PAD = 128         # lane-dense classifier output width (sliced back in JAX)

# --- packed bf16 weight slab: row offsets (all multiples of 16 for bf16 sublane packing) ---
_R_UPD = 0                                  # up_dim        (MLP_HEAD_DIM, POOLING_DIM)
_R_OBJU = _R_UPD + MLP_HEAD_DIM             # obj_unary     (IN_CHANNELS, H)
_R_EDGEU = _R_OBJU + IN_CHANNELS            # edge_unary    (POOLING_DIM, H)
_R_NGRU = _R_EDGEU + POOLING_DIM            # node_gru      (2H, 4H)
_R_EGRU = _R_NGRU + 2 * HIDDEN_DIM          # edge_gru      (2H, 4H)
_R_GATE = _R_EGRU + 2 * HIDDEN_DIM          # 4 gates       (3H, 4)
_R_OFC = _R_GATE + 3 * HIDDEN_DIM           # obj_fc        (H, CLS_PAD)
_R_RFC = _R_OFC + HIDDEN_DIM                # rel_fc        (H, CLS_PAD)
_W_ROWS = _R_RFC + HIDDEN_DIM               # = 448

# --- packed f32 bias slab: one row each ---
_B_UPD, _B_OBJU, _B_EDGEU, _B_NGRU, _B_EGRU, _B_GATE, _B_OFC, _B_RFC = range(8)
_B_ROWS = 8

VMEM = pl.BlockSpec(memory_space=pltpu.MemorySpace.VMEM)


# ----------------------------- fused Pallas kernel -----------------------------
def _imp_fused_kernel(roi_ref, union_ref, adj_ref, adjt_ref, wbuf_ref, bbuf_ref,
                      obj_out_ref, rel_out_ref):
    H = HIDDEN_DIM
    f32 = jnp.float32
    bf16 = jnp.bfloat16

    def mm(x, w):
        # bf16 MXU inputs, f32 accumulation.
        return jnp.dot(x.astype(bf16), w.astype(bf16), preferred_element_type=f32)

    # ---- hoisted static views of the two packed parameter slabs (one DMA each) ----
    w, b = wbuf_ref, bbuf_ref
    upd_w = w[_R_UPD:_R_UPD + MLP_HEAD_DIM, 0:POOLING_DIM]
    obju_w = w[_R_OBJU:_R_OBJU + IN_CHANNELS, 0:H]
    edgeu_w = w[_R_EDGEU:_R_EDGEU + POOLING_DIM, 0:H]
    ngru_w = w[_R_NGRU:_R_NGRU + 2 * H, :]          # (2H, 4H)
    egru_w = w[_R_EGRU:_R_EGRU + 2 * H, :]          # (2H, 4H)
    gate_w = w[_R_GATE:_R_GATE + 3 * H, 0:4]        # (3H, 4)
    ofc_w = w[_R_OFC:_R_OFC + H, :]                 # (H, CLS_PAD)
    rfc_w = w[_R_RFC:_R_RFC + H, :]

    upd_b = b[_B_UPD:_B_UPD + 1, 0:POOLING_DIM]
    obju_b = b[_B_OBJU:_B_OBJU + 1, 0:H]
    edgeu_b = b[_B_EDGEU:_B_EDGEU + 1, 0:H]
    ngru_b = b[_B_NGRU:_B_NGRU + 1, :]              # (1, 4H)
    egru_b = b[_B_EGRU:_B_EGRU + 1, :]
    gate_b = b[_B_GATE:_B_GATE + 1, 0:4]
    ofc_b = b[_B_OFC:_B_OFC + 1, :]
    rfc_b = b[_B_RFC:_B_RFC + 1, :]

    # adjacency one-hots (gather + loop-invariant transposed scatter direction)
    r2s = adj_ref[0]        # (R, O) bf16   subject gather
    r2o = adj_ref[1]        # (R, O) bf16   object  gather
    r2s_t = adjt_ref[0]     # (O, R) bf16   == sub2rel in the reference
    r2o_t = adjt_ref[1]     # (O, R) bf16   == obj2rel in the reference

    def gru_from_pre(pre, h):
        # pre (N, 4H) = [ (gi_r+gh_r) | (gi_z+gh_z) | gi_n | gh_n ]
        r = jax.nn.sigmoid(pre[:, 0:H])
        z = jax.nn.sigmoid(pre[:, H:2 * H])
        n = jnp.tanh(pre[:, 2 * H:3 * H] + r * pre[:, 3 * H:4 * H])
        return (1.0 - z) * n + z * h

    def gru(x_bf, h_bf, h, wp, bp):
        # one fused matmul: cat([x | h]) @ (2H, 4H)
        pre = mm(jnp.concatenate([x_bf, h_bf], axis=-1), wp) + bp
        return gru_from_pre(pre, h)

    def gru_init(x_bf, wp, bp):
        # hidden state == 0 -> only the x-rows of the packed weight contribute,
        # gh reduces to bhh (already folded into bp); z*h term vanishes.
        pre = mm(x_bf, wp[0:H, :]) + bp
        r = jax.nn.sigmoid(pre[:, 0:H])
        z = jax.nn.sigmoid(pre[:, H:2 * H])
        n = jnp.tanh(pre[:, 2 * H:3 * H] + r * pre[:, 3 * H:4 * H])
        return (1.0 - z) * n

    # ---- fused front end: up_dim -> edge_unary(+ReLU); obj_unary ----
    union_pool = mm(union_ref[...], upd_w) + upd_b                        # (R, POOLING)
    rel_rep = jnp.maximum(mm(union_pool, edgeu_w) + edgeu_b, 0.0)         # (R, H)
    obj_rep = mm(roi_ref[...], obju_w) + obju_b                           # (O, H)

    # ---- iterative IMP message passing, fully VMEM resident ----
    vert = gru_init(obj_rep.astype(bf16), ngru_w, ngru_b)                 # (O, H) f32
    edge = gru_init(rel_rep.astype(bf16), egru_w, egru_b)                 # (R, H) f32

    for _ in range(NUM_ITER):  # static, unrolled (NUM_ITER = 3)
        vert_bf = vert.astype(bf16)                                       # hoisted casts
        edge_bf = edge.astype(bf16)

        # on-chip row gather via one-hot matmul on the MXU
        sub_vert = mm(r2s, vert_bf)                                       # (R, H) f32
        obj_vert = mm(r2o, vert_bf)
        sub_bf = sub_vert.astype(bf16)
        obj_bf = obj_vert.astype(bf16)

        # all four sigmoid gates in ONE small MXU matmul (K = 3H), EUP sigmoid only
        gates = jax.nn.sigmoid(
            mm(jnp.concatenate([sub_bf, obj_bf, edge_bf], axis=-1), gate_w) + gate_b)  # (R, 4)

        msg = gates[:, 0:1] * sub_vert + gates[:, 1:2] * obj_vert         # weighted_sub + weighted_obj
        edge_new = gru(msg.astype(bf16), edge_bf, edge, egru_w, egru_b)

        # vertex context uses the OLD edge (matches Scene-Graph-Benchmark IMPContext)
        pre_out = (gates[:, 2:3] * edge).astype(bf16)
        pre_in = (gates[:, 3:4] * edge).astype(bf16)
        ctx = mm(r2s_t, pre_out) + mm(r2o_t, pre_in)                      # (O, H) f32
        vert = gru(ctx.astype(bf16), vert_bf, vert, ngru_w, ngru_b)
        edge = edge_new

    # ---- classifiers, lane-dense (128-wide padded) outputs ----
    obj_out_ref[...] = mm(vert, ofc_w) + ofc_b
    rel_out_ref[...] = mm(edge, rfc_w) + rfc_b


def imp_fused_call(roi_features, union_features, adj, adj_t, params):
    n_obj = roi_features.shape[0]
    n_rel = union_features.shape[0]
    args = (roi_features, union_features, adj, adj_t, params["wbuf"], params["bbuf"])
    return pl.pallas_call(
        _imp_fused_kernel,
        out_shape=(jax.ShapeDtypeStruct((n_obj, CLS_PAD), jnp.float32),
                   jax.ShapeDtypeStruct((n_rel, CLS_PAD), jnp.float32)),
        in_specs=[VMEM] * len(args),
        out_specs=(VMEM, VMEM),
        compiler_params=pltpu.CompilerParams(vmem_limit_bytes=32 * 1024 * 1024),
    )(*args)


# ----------------------------- parameter init + packing -----------------------------
def init_params(key):
    ks = iter(jax.random.split(key, 48))
    H = HIDDEN_DIM

    def xavier(shape):
        fan_in, fan_out = shape[-2], shape[-1]
        return (jax.random.normal(next(ks), shape, jnp.float32)
                * math.sqrt(2.0 / (fan_in + fan_out)))

    def unif(shape, scale):
        return jax.random.uniform(next(ks), shape, jnp.float32, -scale, scale)

    wbuf = jnp.zeros((_W_ROWS, 128), jnp.float32)
    bbuf = jnp.zeros((_B_ROWS, 128), jnp.float32)

    def put_w(buf, row, arr):
        r, c = arr.shape
        return buf.at[row:row + r, 0:c].set(arr)

    def put_b(buf, row, arr):
        return buf.at[row, 0:arr.shape[-1]].set(arr.reshape(-1))

    # --- plain Linears ---
    wbuf = put_w(wbuf, _R_UPD, xavier((MLP_HEAD_DIM, POOLING_DIM)))
    bbuf = put_b(bbuf, _B_UPD, unif((POOLING_DIM,), 0.01))
    wbuf = put_w(wbuf, _R_OBJU, xavier((IN_CHANNELS, H)))
    bbuf = put_b(bbuf, _B_OBJU, unif((H,), 0.01))
    wbuf = put_w(wbuf, _R_EDGEU, xavier((POOLING_DIM, H)))
    bbuf = put_b(bbuf, _B_EDGEU, unif((H,), 0.01))

    # --- GRU cells, packed for a single fused matmul ---
    # torch GRUCell layout (weight_ih: (3H,H) row-packed [r,z,n]) transposed to (H,3H);
    # packed weight (2H,4H) = [Wih_rz;Whh_rz | Wih_n;0 | 0;Whh_n], bias (1,4H) =
    # [bih_rz + bhh_rz | bih_n | bhh_n].
    def pack_gru():
        scale = 1.0 / math.sqrt(H)
        wih = unif((H, 3 * H), scale)
        whh = unif((H, 3 * H), scale)
        bih = unif((1, 3 * H), scale)
        bhh = unif((1, 3 * H), scale)
        wp = jnp.zeros((2 * H, 4 * H), jnp.float32)
        wp = wp.at[0:H, 0:2 * H].set(wih[:, 0:2 * H])
        wp = wp.at[0:H, 2 * H:3 * H].set(wih[:, 2 * H:3 * H])
        wp = wp.at[H:2 * H, 0:2 * H].set(whh[:, 0:2 * H])
        wp = wp.at[H:2 * H, 3 * H:4 * H].set(whh[:, 2 * H:3 * H])
        bp = jnp.concatenate([bih[:, 0:2 * H] + bhh[:, 0:2 * H],
                              bih[:, 2 * H:3 * H], bhh[:, 2 * H:3 * H]], axis=-1)
        return wp, bp

    nw, nb = pack_gru()
    ew, eb = pack_gru()
    wbuf = put_w(wbuf, _R_NGRU, nw)
    bbuf = put_b(bbuf, _B_NGRU, nb)
    wbuf = put_w(wbuf, _R_EGRU, ew)
    bbuf = put_b(bbuf, _B_EGRU, eb)

    # --- the four gate Linears(2H,1), packed into a single (3H,4) matmul weight ---
    # input layout inside kernel: cat([sub_vert | obj_vert | edge]);
    # gate column order: [sub_vert_w_fc, obj_vert_w_fc, out_edge_w_fc, in_edge_w_fc];
    # vert half of cat([vert, edge]) comes from sub_vert for cols 0/2, obj_vert for cols 1/3;
    # edge half (rows 2H:3H) is shared by all gates.
    gate_w = jnp.zeros((3 * H, 4), jnp.float32)
    for col, vert_rows in ((0, 0), (1, H), (2, 0), (3, H)):
        wcat = xavier((2 * H, 1))  # (transposed) torch Linear(2H, 1) weight
        gate_w = gate_w.at[vert_rows:vert_rows + H, col].set(wcat[0:H, 0])
        gate_w = gate_w.at[2 * H:3 * H, col].set(wcat[H:2 * H, 0])
    wbuf = put_w(wbuf, _R_GATE, gate_w)
    bbuf = put_b(bbuf, _B_GATE, unif((4,), 1.0 / math.sqrt(2 * H)))

    # --- classifiers, padded to 128 lanes (sliced back in the wrapper) ---
    def put_cls(wb, bb, wrow, brow, out_d):
        w = xavier((H, out_d))
        bias = unif((out_d,), 0.01)
        return put_w(wb, wrow, w), put_b(bb, brow, bias)

    wbuf, bbuf = put_cls(wbuf, bbuf, _R_OFC, _B_OFC, NUM_OBJ_CLS)
    wbuf, bbuf = put_cls(wbuf, bbuf, _R_RFC, _B_RFC, NUM_REL_CLS)

    return {"wbuf": wbuf.astype(jnp.bfloat16), "bbuf": bbuf}


# ----------------------------- forward -----------------------------
def imp_predictor_forward(params, num_objs, rel_pair_idxs, roi_features, union_features):
    num_rels = [int(r.shape[0]) for r in rel_pair_idxs]
    assert len(num_rels) == len(num_objs)
    obj_count = int(sum(num_objs))

    # global subject / object indices (per-image offsets) -- host glue
    sub_global, obj_global, off = [], [], 0
    for pair_idx, no in zip(rel_pair_idxs, num_objs):
        sub_global.append(pair_idx[:, 0] + off)
        obj_global.append(pair_idx[:, 1] + off)
        off += no
    sub_global = jnp.concatenate(sub_global)
    obj_global = jnp.concatenate(obj_global)

    # gather-orientation one-hot adjacency (R, O) and its loop-invariant transpose (O, R),
    # each stacked into a single bf16 buffer (0/1 exact) -> one DMA per buffer.
    r2s = jax.nn.one_hot(sub_global, obj_count, dtype=jnp.bfloat16)
    r2o = jax.nn.one_hot(obj_global, obj_count, dtype=jnp.bfloat16)
    adj = jnp.stack([r2s, r2o], axis=0)                       # (2, R, O)
    adj_t = jnp.stack([r2s.T, r2o.T], axis=0)                 # (2, O, R) == [sub2rel, obj2rel]

    obj_pad, rel_pad = imp_fused_call(roi_features, union_features, adj, adj_t, params)
    obj_dists = obj_pad[:, :NUM_OBJ_CLS]
    rel_dists = rel_pad[:, :NUM_REL_CLS]

    # TODO(synk): 'predcls' mode (one-hot GT labels) not modeled; sgdet/sgcls path used.
    # use_bias is False in IMPPredictor -> no FrequencyBias branch.

    def split(x, sizes):
        out, o = [], 0
        for s in sizes:
            out.append(x[o:o + s])
            o += s
        return out

    add_losses = {}
    return split(obj_dists, num_objs), split(rel_dists, num_rels), add_losses


# ----------------------------- main -----------------------------
if __name__ == "__main__":
    key = jax.random.PRNGKey(0)
    kp, k1, k2 = jax.random.split(key, 3)
    params = init_params(kp)

    # 2 "images": 5 and 3 proposals; 6 and 4 relation pairs.
    num_objs = [5, 3]
    rel_pair_idxs = [
        jnp.array([[0, 1], [1, 2], [2, 3], [3, 4], [4, 0], [1, 3]], dtype=jnp.int32),
        jnp.array([[0, 1], [1, 2], [2, 0], [0, 2]], dtype=jnp.int32),
    ]
    roi_features = jax.random.normal(k1, (sum(num_objs), IN_CHANNELS), jnp.float32)
    union_features = jax.random.normal(
        k2, (sum(int(r.shape[0]) for r in rel_pair_idxs), MLP_HEAD_DIM), jnp.float32)

    obj_dists, rel_dists, add_losses = imp_predictor_forward(
        params, num_objs, rel_pair_idxs, roi_features, union_features)

    jax.block_until_ready((obj_dists, rel_dists))
    assert [tuple(o.shape) for o in obj_dists] == [(5, NUM_OBJ_CLS), (3, NUM_OBJ_CLS)]
    assert [tuple(r.shape) for r in rel_dists] == [(6, NUM_REL_CLS), (4, NUM_REL_CLS)]
    assert all(bool(jnp.isfinite(o).all()) for o in obj_dists)
    assert all(bool(jnp.isfinite(r).all()) for r in rel_dists)
    print("KERNEL_OK")
</pallas_src>

<mosaic_0001>
module attributes {stable_mosaic.version = 11 : i64} {
  func.func @_imp_fused_kernel(%arg0: memref<8x64xf32, #tpu.memory_space<vmem>>, %arg1: memref<10x32xf32, #tpu.memory_space<vmem>>, %arg2: memref<2x10x8xbf16, #tpu.memory_space<vmem>>, %arg3: memref<2x8x10xbf16, #tpu.memory_space<vmem>>, %arg4: memref<448x128xbf16, #tpu.memory_space<vmem>>, %arg5: memref<8x128xf32, #tpu.memory_space<vmem>>, %arg6: memref<8x128xf32, #tpu.memory_space<vmem>>, %arg7: memref<10x128xf32, #tpu.memory_space<vmem>>) attributes {dimension_semantics = [], scalar_prefetch = 0 : i64, scratch_operands = 0 : i64, tpu.core_type = #tpu.core_type<tc>} {
    %c0 = arith.constant 0 : index
    %c0_0 = arith.constant 0 : index
    %0 = vector.load %arg4[%c0, %c0_0] : memref<448x128xbf16, #tpu.memory_space<vmem>>, vector<32x64xbf16>
    %c32 = arith.constant 32 : index
    %c0_1 = arith.constant 0 : index
    %1 = vector.load %arg4[%c32, %c0_1] : memref<448x128xbf16, #tpu.memory_space<vmem>>, vector<64x32xbf16>
    %c96 = arith.constant 96 : index
    %c0_2 = arith.constant 0 : index
    %2 = vector.load %arg4[%c96, %c0_2] : memref<448x128xbf16, #tpu.memory_space<vmem>>, vector<64x32xbf16>
    %c160 = arith.constant 160 : index
    %c0_3 = arith.constant 0 : index
    %3 = vector.load %arg4[%c160, %c0_3] : memref<448x128xbf16, #tpu.memory_space<vmem>>, vector<64x128xbf16>
    %c224 = arith.constant 224 : index
    %c0_4 = arith.constant 0 : index
    %4 = vector.load %arg4[%c224, %c0_4] : memref<448x128xbf16, #tpu.memory_space<vmem>>, vector<64x128xbf16>
    %c288 = arith.constant 288 : index
    %c0_5 = arith.constant 0 : index
    %5 = vector.load %arg4[%c288, %c0_5] : memref<448x128xbf16, #tpu.memory_space<vmem>>, vector<96x4xbf16>
    %c384 = arith.constant 384 : index
    %c0_6 = arith.constant 0 : index
    %6 = vector.load %arg4[%c384, %c0_6] : memref<448x128xbf16, #tpu.memory_space<vmem>>, vector<32x128xbf16>
    %c416 = arith.constant 416 : index
    %c0_7 = arith.constant 0 : index
    %7 = vector.load %arg4[%c416, %c0_7] : memref<448x128xbf16, #tpu.memory_space<vmem>>, vector<32x128xbf16>
    %c0_8 = arith.constant 0 : index
    %c0_9 = arith.constant 0 : index
    %8 = vector.load %arg5[%c0_8, %c0_9] : memref<8x128xf32, #tpu.memory_space<vmem>>, vector<1x64xf32>
    %c1 = arith.constant 1 : index
    %c0_10 = arith.constant 0 : index
    %9 = vector.load %arg5[%c1, %c0_10] : memref<8x128xf32, #tpu.memory_space<vmem>>, vector<1x32xf32>
    %c2 = arith.constant 2 : index
    %c0_11 = arith.constant 0 : index
    %10 = vector.load %arg5[%c2, %c0_11] : memref<8x128xf32, #tpu.memory_space<vmem>>, vector<1x32xf32>
    %c3 = arith.constant 3 : index
    %c0_12 = arith.constant 0 : index
    %11 = vector.load %arg5[%c3, %c0_12] : memref<8x128xf32, #tpu.memory_space<vmem>>, vector<1x128xf32>
    %c4 = arith.constant 4 : index
    %c0_13 = arith.constant 0 : index
    %12 = vector.load %arg5[%c4, %c0_13] : memref<8x128xf32, #tpu.memory_space<vmem>>, vector<1x128xf32>
    %c5 = arith.constant 5 : index
    %c0_14 = arith.constant 0 : index
    %13 = vector.load %arg5[%c5, %c0_14] : memref<8x128xf32, #tpu.memory_space<vmem>>, vector<1x4xf32>
    %c6 = arith.constant 6 : index
    %c0_15 = arith.constant 0 : index
    %14 = vector.load %arg5[%c6, %c0_15] : memref<8x128xf32, #tpu.memory_space<vmem>>, vector<1x128xf32>
    %c7 = arith.constant 7 : index
    %c0_16 = arith.constant 0 : index
    %15 = vector.load %arg5[%c7, %c0_16] : memref<8x128xf32, #tpu.memory_space<vmem>>, vector<1x128xf32>
    %c0_17 = arith.constant 0 : index
    %c0_18 = arith.constant 0 : index
    %c0_19 = arith.constant 0 : index
    %16 = vector.load %arg2[%c0_17, %c0_18, %c0_19] : memref<2x10x8xbf16, #tpu.memory_space<vmem>>, vector<1x10x8xbf16>
    %17 = vector.shape_cast %16 : vector<1x10x8xbf16> to vector<10x8xbf16>
    %c1_20 = arith.constant 1 : index
    %c0_21 = arith.constant 0 : index
    %c0_22 = arith.constant 0 : index
    %18 = vector.load %arg2[%c1_20, %c0_21, %c0_22] : memref<2x10x8xbf16, #tpu.memory_space<vmem>>, vector<1x10x8xbf16>
    %19 = vector.shape_cast %18 : vector<1x10x8xbf16> to vector<10x8xbf16>
    %c0_23 = arith.constant 0 : index
    %c0_24 = arith.constant 0 : index
    %c0_25 = arith.constant 0 : index
    %20 = vector.load %arg3[%c0_23, %c0_24, %c0_25] : memref<2x8x10xbf16, #tpu.memory_space<vmem>>, vector<1x8x10xbf16>
    %21 = vector.shape_cast %20 : vector<1x8x10xbf16> to vector<8x10xbf16>
    %c1_26 = arith.constant 1 : index
    %c0_27 = arith.constant 0 : index
    %c0_28 = arith.constant 0 : index
    %22 = vector.load %arg3[%c1_26, %c0_27, %c0_28] : memref<2x8x10xbf16, #tpu.memory_space<vmem>>, vector<1x8x10xbf16>
    %23 = vector.shape_cast %22 : vector<1x8x10xbf16> to vector<8x10xbf16>
    %c0_29 = arith.constant 0 : index
    %c0_30 = arith.constant 0 : index
    %24 = vector.load %arg1[%c0_29, %c0_30] : memref<10x32xf32, #tpu.memory_space<vmem>>, vector<10x32xf32>
    %25 = arith.truncf %24 : vector<10x32xf32> to vector<10x32xbf16>
    %cst = arith.constant dense<0.000000e+00> : vector<10x64xf32>
    %26 = tpu.matmul %25, %0, %cst {dimension_numbers = #tpu.dot_dimension_numbers<[1], [0], [0], [1], [0, 0, 1, 1], [], []>} : vector<10x32xbf16>, vector<32x64xbf16>, vector<10x64xf32> -> vector<10x64xf32>
    %27 = vector.broadcast %8 : vector<1x64xf32> to vector<10x64xf32>
    %28 = arith.addf %26, %27 : vector<10x64xf32>
    %29 = arith.truncf %28 : vector<10x64xf32> to vector<10x64xbf16>
    %cst_31 = arith.constant dense<0.000000e+00> : vector<10x32xf32>
    %30 = tpu.matmul %29, %2, %cst_31 {dimension_numbers = #tpu.dot_dimension_numbers<[1], [0], [0], [1], [0, 0, 1, 1], [], []>} : vector<10x64xbf16>, vector<64x32xbf16>, vector<10x32xf32> -> vector<10x32xf32>
    %31 = vector.broadcast %10 : vector<1x32xf32> to vector<10x32xf32>
    %32 = arith.addf %30, %31 : vector<10x32xf32>
    %cst_32 = arith.constant 0.000000e+00 : f32
    %33 = vector.broadcast %cst_32 : f32 to vector<10x32xf32>
    %34 = arith.maximumf %32, %33 : vector<10x32xf32>
    %c0_33 = arith.constant 0 : index
    %c0_34 = arith.constant 0 : index
    %35 = vector.load %arg0[%c0_33, %c0_34] : memref<8x64xf32, #tpu.memory_space<vmem>>, vector<8x64xf32>
    %36 = arith.truncf %35 : vector<8x64xf32> to vector<8x64xbf16>
    %cst_35 = arith.constant dense<0.000000e+00> : vector<8x32xf32>
    %37 = tpu.matmul %36, %1, %cst_35 {dimension_numbers = #tpu.dot_dimension_numbers<[1], [0], [0], [1], [0, 0, 1, 1], [], []>} : vector<8x64xbf16>, vector<64x32xbf16>, vector<8x32xf32> -> vector<8x32xf32>
    %38 = vector.broadcast %9 : vector<1x32xf32> to vector<8x32xf32>
    %39 = arith.addf %37, %38 : vector<8x32xf32>
    %40 = arith.truncf %39 : vector<8x32xf32> to vector<8x32xbf16>
    %41 = vector.extract_strided_slice %3 {offsets = [0, 0], sizes = [32, 128], strides = [1, 1]} : vector<64x128xbf16> to vector<32x128xbf16>
    %cst_36 = arith.constant dense<0.000000e+00> : vector<8x128xf32>
    %42 = tpu.matmul %40, %41, %cst_36 {dimension_numbers = #tpu.dot_dimension_numbers<[1], [0], [0], [1], [0, 0, 1, 1], [], []>} : vector<8x32xbf16>, vector<32x128xbf16>, vector<8x128xf32> -> vector<8x128xf32>
    %43 = vector.broadcast %11 : vector<1x128xf32> to vector<8x128xf32>
    %44 = arith.addf %42, %43 : vector<8x128xf32>
    %45 = vector.extract_strided_slice %44 {offsets = [0, 0], sizes = [8, 32], strides = [1, 1]} : vector<8x128xf32> to vector<8x32xf32>
    %46 = arith.negf %45 : vector<8x32xf32>
    %47 = math.exp %46 : vector<8x32xf32>
    %cst_37 = arith.constant 1.000000e+00 : f32
    %48 = vector.broadcast %cst_37 : f32 to vector<8x32xf32>
    %49 = arith.addf %48, %47 : vector<8x32xf32>
    %50 = arith.divf %48, %49 : vector<8x32xf32>
    %51 = vector.extract_strided_slice %44 {offsets = [0, 32], sizes = [8, 32], strides = [1, 1]} : vector<8x128xf32> to vector<8x32xf32>
    %52 = arith.negf %51 : vector<8x32xf32>
    %53 = math.exp %52 : vector<8x32xf32>
    %cst_38 = arith.constant 1.000000e+00 : f32
    %54 = vector.broadcast %cst_38 : f32 to vector<8x32xf32>
    %55 = arith.addf %54, %53 : vector<8x32xf32>
    %56 = arith.divf %54, %55 : vector<8x32xf32>
    %57 = vector.extract_strided_slice %44 {offsets = [0, 64], sizes = [8, 32], strides = [1, 1]} : vector<8x128xf32> to vector<8x32xf32>
    %58 = vector.extract_strided_slice %44 {offsets = [0, 96], sizes = [8, 32], strides = [1, 1]} : vector<8x128xf32> to vector<8x32xf32>
    %59 = arith.mulf %50, %58 : vector<8x32xf32>
    %60 = arith.addf %57, %59 : vector<8x32xf32>
    %61 = math.tanh %60 : vector<8x32xf32>
    %cst_39 = arith.constant 1.000000e+00 : f32
    %62 = vector.broadcast %cst_39 : f32 to vector<8x32xf32>
    %63 = arith.subf %62, %56 : vector<8x32xf32>
    %64 = arith.mulf %63, %61 : vector<8x32xf32>
    %65 = arith.truncf %34 : vector<10x32xf32> to vector<10x32xbf16>
    %66 = vector.extract_strided_slice %4 {offsets = [0, 0], sizes = [32, 128], strides = [1, 1]} : vector<64x128xbf16> to vector<32x128xbf16>
    %cst_40 = arith.constant dense<0.000000e+00> : vector<10x128xf32>
    %67 = tpu.matmul %65, %66, %cst_40 {dimension_numbers = #tpu.dot_dimension_numbers<[1], [0], [0], [1], [0, 0, 1, 1], [], []>} : vector<10x32xbf16>, vector<32x128xbf16>, vector<10x128xf32> -> vector<10x128xf32>
    %68 = vector.broadcast %12 : vector<1x128xf32> to vector<10x128xf32>
    %69 = arith.addf %67, %68 : vector<10x128xf32>
    %70 = vector.extract_strided_slice %69 {offsets = [0, 0], sizes = [10, 32], strides = [1, 1]} : vector<10x128xf32> to vector<10x32xf32>
    %71 = arith.negf %70 : vector<10x32xf32>
    %72 = math.exp %71 : vector<10x32xf32>
    %cst_41 = arith.constant 1.000000e+00 : f32
    %73 = vector.broadcast %cst_41 : f32 to vector<10x32xf32>
    %74 = arith.addf %73, %72 : vector<10x32xf32>
    %75 = arith.divf %73, %74 : vector<10x32xf32>
    %76 = vector.extract_strided_slice %69 {offsets = [0, 32], sizes = [10, 32], strides = [1, 1]} : vector<10x128xf32> to vector<10x32xf32>
    %77 = arith.negf %76 : vector<10x32xf32>
    %78 = math.exp %77 : vector<10x32xf32>
    %cst_42 = arith.constant 1.000000e+00 : f32
    %79 = vector.broadcast %cst_42 : f32 to vector<10x32xf32>
    %80 = arith.addf %79, %78 : vector<10x32xf32>
    %81 = arith.divf %79, %80 : vector<10x32xf32>
    %82 = vector.extract_strided_slice %69 {offsets = [0, 64], sizes = [10, 32], strides = [1, 1]} : vector<10x128xf32> to vector<10x32xf32>
    %83 = vector.extract_strided_slice %69 {offsets = [0, 96], sizes = [10, 32], strides = [1, 1]} : vector<10x128xf32> to vector<10x32xf32>
    %84 = arith.mulf %75, %83 : vector<10x32xf32>
    %85 = arith.addf %82, %84 : vector<10x32xf32>
    %86 = math.tanh %85 : vector<10x32xf32>
    %cst_43 = arith.constant 1.000000e+00 : f32
    %87 = vector.broadcast %cst_43 : f32 to vector<10x32xf32>
    %88 = arith.subf %87, %81 : vector<10x32xf32>
    %89 = arith.mulf %88, %86 : vector<10x32xf32>
    %90 = arith.truncf %64 : vector<8x32xf32> to vector<8x32xbf16>
    %91 = arith.truncf %89 : vector<10x32xf32> to vector<10x32xbf16>
    %cst_44 = arith.constant dense<0.000000e+00> : vector<10x32xf32>
    %92 = tpu.matmul %17, %90, %cst_44 {dimension_numbers = #tpu.dot_dimension_numbers<[1], [0], [0], [1], [0, 0, 1, 1], [], []>} : vector<10x8xbf16>, vector<8x32xbf16>, vector<10x32xf32> -> vector<10x32xf32>
    %cst_45 = arith.constant dense<0.000000e+00> : vector<10x32xf32>
    %93 = tpu.matmul %19, %90, %cst_45 {dimension_numbers = #tpu.dot_dimension_numbers<[1], [0], [0], [1], [0, 0, 1, 1], [], []>} : vector<10x8xbf16>, vector<8x32xbf16>, vector<10x32xf32> -> vector<10x32xf32>
    %94 = arith.truncf %92 : vector<10x32xf32> to vector<10x32xbf16>
    %95 = arith.truncf %93 : vector<10x32xf32> to vector<10x32xbf16>
    %96 = tpu.concatenate %94, %95, %91 in 1 : vector<10x32xbf16>, vector<10x32xbf16>, vector<10x32xbf16> -> vector<10x96xbf16>
    %cst_46 = arith.constant dense<0.000000e+00> : vector<10x4xf32>
    %97 = tpu.matmul %96, %5, %cst_46 {dimension_numbers = #tpu.dot_dimension_numbers<[1], [0], [0], [1], [0, 0, 1, 1], [], []>} : vector<10x96xbf16>, vector<96x4xbf16>, vector<10x4xf32> -> vector<10x4xf32>
    %98 = vector.broadcast %13 : vector<1x4xf32> to vector<10x4xf32>
    %99 = arith.addf %97, %98 : vector<10x4xf32>
    %100 = arith.negf %99 : vector<10x4xf32>
    %101 = math.exp %100 : vector<10x4xf32>
    %cst_47 = arith.constant 1.000000e+00 : f32
    %102 = vector.broadcast %cst_47 : f32 to vector<10x4xf32>
    %103 = arith.addf %102, %101 : vector<10x4xf32>
    %104 = arith.divf %102, %103 : vector<10x4xf32>
    %105 = vector.extract_strided_slice %104 {offsets = [0, 0], sizes = [10, 1], strides = [1, 1]} : vector<10x4xf32> to vector<10x1xf32>
    %106 = vector.broadcast %105 : vector<10x1xf32> to vector<10x32xf32>
    %107 = arith.mulf %106, %92 : vector<10x32xf32>
    %108 = vector.extract_strided_slice %104 {offsets = [0, 1], sizes = [10, 1], strides = [1, 1]} : vector<10x4xf32> to vector<10x1xf32>
    %109 = vector.broadcast %108 : vector<10x1xf32> to vector<10x32xf32>
    %110 = arith.mulf %109, %93 : vector<10x32xf32>
    %111 = arith.addf %107, %110 : vector<10x32xf32>
    %112 = arith.truncf %111 : vector<10x32xf32> to vector<10x32xbf16>
    %113 = tpu.concatenate %112, %91 in 1 : vector<10x32xbf16>, vector<10x32xbf16> -> vector<10x64xbf16>
    %cst_48 = arith.constant dense<0.000000e+00> : vector<10x128xf32>
    %114 = tpu.matmul %113, %4, %cst_48 {dimension_numbers = #tpu.dot_dimension_numbers<[1], [0], [0], [1], [0, 0, 1, 1], [], []>} : vector<10x64xbf16>, vector<64x128xbf16>, vector<10x128xf32> -> vector<10x128xf32>
    %115 = vector.broadcast %12 : vector<1x128xf32> to vector<10x128xf32>
    %116 = arith.addf %114, %115 : vector<10x128xf32>
    %117 = vector.extract_strided_slice %116 {offsets = [0, 0], sizes = [10, 32], strides = [1, 1]} : vector<10x128xf32> to vector<10x32xf32>
    %118 = arith.negf %117 : vector<10x32xf32>
    %119 = math.exp %118 : vector<10x32xf32>
    %cst_49 = arith.constant 1.000000e+00 : f32
    %120 = vector.broadcast %cst_49 : f32 to vector<10x32xf32>
    %121 = arith.addf %120, %119 : vector<10x32xf32>
    %122 = arith.divf %120, %121 : vector<10x32xf32>
    %123 = vector.extract_strided_slice %116 {offsets = [0, 32], sizes = [10, 32], strides = [1, 1]} : vector<10x128xf32> to vector<10x32xf32>
    %124 = arith.negf %123 : vector<10x32xf32>
    %125 = math.exp %124 : vector<10x32xf32>
    %cst_50 = arith.constant 1.000000e+00 : f32
    %126 = vector.broadcast %cst_50 : f32 to vector<10x32xf32>
    %127 = arith.addf %126, %125 : vector<10x32xf32>
    %128 = arith.divf %126, %127 : vector<10x32xf32>
    %129 = vector.extract_strided_slice %116 {offsets = [0, 64], sizes = [10, 32], strides = [1, 1]} : vector<10x128xf32> to vector<10x32xf32>
    %130 = vector.extract_strided_slice %116 {offsets = [0, 96], sizes = [10, 32], strides = [1, 1]} : vector<10x128xf32> to vector<10x32xf32>
    %131 = arith.mulf %122, %130 : vector<10x32xf32>
    %132 = arith.addf %129, %131 : vector<10x32xf32>
    %133 = math.tanh %132 : vector<10x32xf32>
    %cst_51 = arith.constant 1.000000e+00 : f32
    %134 = vector.broadcast %cst_51 : f32 to vector<10x32xf32>
    %135 = arith.subf %134, %128 : vector<10x32xf32>
    %136 = arith.mulf %135, %133 : vector<10x32xf32>
    %137 = arith.mulf %128, %89 : vector<10x32xf32>
    %138 = arith.addf %136, %137 : vector<10x32xf32>
    %139 = vector.extract_strided_slice %104 {offsets = [0, 2], sizes = [10, 1], strides = [1, 1]} : vector<10x4xf32> to vector<10x1xf32>
    %140 = vector.broadcast %139 : vector<10x1xf32> to vector<10x32xf32>
    %141 = arith.mulf %140, %89 : vector<10x32xf32>
    %142 = arith.truncf %141 : vector<10x32xf32> to vector<10x32xbf16>
    %143 = vector.extract_strided_slice %104 {offsets = [0, 3], sizes = [10, 1], strides = [1, 1]} : vector<10x4xf32> to vector<10x1xf32>
    %144 = vector.broadcast %143 : vector<10x1xf32> to vector<10x32xf32>
    %145 = arith.mulf %144, %89 : vector<10x32xf32>
    %146 = arith.truncf %145 : vector<10x32xf32> to vector<10x32xbf16>
    %cst_52 = arith.constant dense<0.000000e+00> : vector<8x32xf32>
    %147 = tpu.matmul %21, %142, %cst_52 {dimension_numbers = #tpu.dot_dimension_numbers<[1], [0], [0], [1], [0, 0, 1, 1], [], []>} : vector<8x10xbf16>, vector<10x32xbf16>, vector<8x32xf32> -> vector<8x32xf32>
    %cst_53 = arith.constant dense<0.000000e+00> : vector<8x32xf32>
    %148 = tpu.matmul %23, %146, %cst_53 {dimension_numbers = #tpu.dot_dimension_numbers<[1], [0], [0], [1], [0, 0, 1, 1], [], []>} : vector<8x10xbf16>, vector<10x32xbf16>, vector<8x32xf32> -> vector<8x32xf32>
    %149 = arith.addf %147, %148 : vector<8x32xf32>
    %150 = arith.truncf %149 : vector<8x32xf32> to vector<8x32xbf16>
    %151 = tpu.concatenate %150, %90 in 1 : vector<8x32xbf16>, vector<8x32xbf16> -> vector<8x64xbf16>
    %cst_54 = arith.constant dense<0.000000e+00> : vector<8x128xf32>
    %152 = tpu.matmul %151, %3, %cst_54 {dimension_numbers = #tpu.dot_dimension_numbers<[1], [0], [0], [1], [0, 0, 1, 1], [], []>} : vector<8x64xbf16>, vector<64x128xbf16>, vector<8x128xf32> -> vector<8x128xf32>
    %153 = vector.broadcast %11 : vector<1x128xf32> to vector<8x128xf32>
    %154 = arith.addf %152, %153 : vector<8x128xf32>
    %155 = vector.extract_strided_slice %154 {offsets = [0, 0], sizes = [8, 32], strides = [1, 1]} : vector<8x128xf32> to vector<8x32xf32>
    %156 = arith.negf %155 : vector<8x32xf32>
    %157 = math.exp %156 : vector<8x32xf32>
    %cst_55 = arith.constant 1.000000e+00 : f32
    %158 = vector.broadcast %cst_55 : f32 to vector<8x32xf32>
    %159 = arith.addf %158, %157 : vector<8x32xf32>
    %160 = arith.divf %158, %159 : vector<8x32xf32>
    %161 = vector.extract_strided_slice %154 {offsets = [0, 32], sizes = [8, 32], strides = [1, 1]} : vector<8x128xf32> to vector<8x32xf32>
    %162 = arith.negf %161 : vector<8x32xf32>
    %163 = math.exp %162 : vector<8x32xf32>
    %cst_56 = arith.constant 1.000000e+00 : f32
    %164 = vector.broadcast %cst_56 : f32 to vector<8x32xf32>
    %165 = arith.addf %164, %163 : vector<8x32xf32>
    %166 = arith.divf %164, %165 : vector<8x32xf32>
    %167 = vector.extract_strided_slice %154 {offsets = [0, 64], sizes = [8, 32], strides = [1, 1]} : vector<8x128xf32> to vector<8x32xf32>
    %168 = vector.extract_strided_slice %154 {offsets = [0, 96], sizes = [8, 32], strides = [1, 1]} : vector<8x128xf32> to vector<8x32xf32>
    %169 = arith.mulf %160, %168 : vector<8x32xf32>
    %170 = arith.addf %167, %169 : vector<8x32xf32>
    %171 = math.tanh %170 : vector<8x32xf32>
    %cst_57 = arith.constant 1.000000e+00 : f32
    %172 = vector.broadcast %cst_57 : f32 to vector<8x32xf32>
    %173 = arith.subf %172, %166 : vector<8x32xf32>
    %174 = arith.mulf %173, %171 : vector<8x32xf32>
    %175 = arith.mulf %166, %64 : vector<8x32xf32>
    %176 = arith.addf %174, %175 : vector<8x32xf32>
    %177 = arith.truncf %176 : vector<8x32xf32> to vector<8x32xbf16>
    %178 = arith.truncf %138 : vector<10x32xf32> to vector<10x32xbf16>
    %cst_58 = arith.constant dense<0.000000e+00> : vector<10x32xf32>
    %179 = tpu.matmul %17, %177, %cst_58 {dimension_numbers = #tpu.dot_dimension_numbers<[1], [0], [0], [1], [0, 0, 1, 1], [], []>} : vector<10x8xbf16>, vector<8x32xbf16>, vector<10x32xf32> -> vector<10x32xf32>
    %cst_59 = arith.constant dense<0.000000e+00> : vector<10x32xf32>
    %180 = tpu.matmul %19, %177, %cst_59 {dimension_numbers = #tpu.dot_dimension_numbers<[1], [0], [0], [1], [0, 0, 1, 1], [], []>} : vector<10x8xbf16>, vector<8x32xbf16>, vector<10x32xf32> -> vector<10x32xf32>
    %181 = arith.truncf %179 : vector<10x32xf32> to vector<10x32xbf16>
    %182 = arith.truncf %180 : vector<10x32xf32> to vector<10x32xbf16>
    %183 = tpu.concatenate %181, %182, %178 in 1 : vector<10x32xbf16>, vector<10x32xbf16>, vector<10x32xbf16> -> vector<10x96xbf16>
    %cst_60 = arith.constant dense<0.000000e+00> : vector<10x4xf32>
    %184 = tpu.matmul %183, %5, %cst_60 {dimension_numbers = #tpu.dot_dimension_numbers<[1], [0], [0], [1], [0, 0, 1, 1], [], []>} : vector<10x96xbf16>, vector<96x4xbf16>, vector<10x4xf32> -> vector<10x4xf32>
    %185 = vector.broadcast %13 : vector<1x4xf32> to vector<10x4xf32>
    %186 = arith.addf %184, %185 : vector<10x4xf32>
    %187 = arith.negf %186 : vector<10x4xf32>
    %188 = math.exp %187 : vector<10x4xf32>
    %cst_61 = arith.constant 1.000000e+00 : f32
    %189 = vector.broadcast %cst_61 : f32 to vector<10x4xf32>
    %190 = arith.addf %189, %188 : vector<10x4xf32>
    %191 = arith.divf %189, %190 : vector<10x4xf32>
    %192 = vector.extract_strided_slice %191 {offsets = [0, 0], sizes = [10, 1], strides = [1, 1]} : vector<10x4xf32> to vector<10x1xf32>
    %193 = vector.broadcast %192 : vector<10x1xf32> to vector<10x32xf32>
    %194 = arith.mulf %193, %179 : vector<10x32xf32>
    %195 = vector.extract_strided_slice %191 {offsets = [0, 1], sizes = [10, 1], strides = [1, 1]} : vector<10x4xf32> to vector<10x1xf32>
    %196 = vector.broadcast %195 : vector<10x1xf32> to vector<10x32xf32>
    %197 = arith.mulf %196, %180 : vector<10x32xf32>
    %198 = arith.addf %194, %197 : vector<10x32xf32>
    %199 = arith.truncf %198 : vector<10x32xf32> to vector<10x32xbf16>
    %200 = tpu.concatenate %199, %178 in 1 : vector<10x32xbf16>, vector<10x32xbf16> -> vector<10x64xbf16>
    %cst_62 = arith.constant dense<0.000000e+00> : vector<10x128xf32>
    %201 = tpu.matmul %200, %4, %cst_62 {dimension_numbers = #tpu.dot_dimension_numbers<[1], [0], [0], [1], [0, 0, 1, 1], [], []>} : vector<10x64xbf16>, vector<64x128xbf16>, vector<10x128xf32> -> vector<10x128xf32>
    %202 = vector.broadcast %12 : vector<1x128xf32> to vector<10x128xf32>
    %203 = arith.addf %201, %202 : vector<10x128xf32>
    %204 = vector.extract_strided_slice %203 {offsets = [0, 0], sizes = [10, 32], strides = [1, 1]} : vector<10x128xf32> to vector<10x32xf32>
    %205 = arith.negf %204 : vector<10x32xf32>
    %206 = math.exp %205 : vector<10x32xf32>
    %cst_63 = arith.constant 1.000000e+00 : f32
    %207 = vector.broadcast %cst_63 : f32 to vector<10x32xf32>
    %208 = arith.addf %207, %206 : vector<10x32xf32>
    %209 = arith.divf %207, %208 : vector<10x32xf32>
    %210 = vector.extract_strided_slice %203 {offsets = [0, 32], sizes = [10, 32], strides = [1, 1]} : vector<10x128xf32> to vector<10x32xf32>
    %211 = arith.negf %210 : vector<10x32xf32>
    %212 = math.exp %211 : vector<10x32xf32>
    %cst_64 = arith.constant 1.000000e+00 : f32
    %213 = vector.broadcast %cst_64 : f32 to vector<10x32xf32>
    %214 = arith.addf %213, %212 : vector<10x32xf32>
    %215 = arith.divf %213, %214 : vector<10x32xf32>
    %216 = vector.extract_strided_slice %203 {offsets = [0, 64], sizes = [10, 32], strides = [1, 1]} : vector<10x128xf32> to vector<10x32xf32>
    %217 = vector.extract_strided_slice %203 {offsets = [0, 96], sizes = [10, 32], strides = [1, 1]} : vector<10x128xf32> to vector<10x32xf32>
    %218 = arith.mulf %209, %217 : vector<10x32xf32>
    %219 = arith.addf %216, %218 : vector<10x32xf32>
    %220 = math.tanh %219 : vector<10x32xf32>
    %cst_65 = arith.constant 1.000000e+00 : f32
    %221 = vector.broadcast %cst_65 : f32 to vector<10x32xf32>
    %222 = arith.subf %221, %215 : vector<10x32xf32>
    %223 = arith.mulf %222, %220 : vector<10x32xf32>
    %224 = arith.mulf %215, %138 : vector<10x32xf32>
    %225 = arith.addf %223, %224 : vector<10x32xf32>
    %226 = vector.extract_strided_slice %191 {offsets = [0, 2], sizes = [10, 1], strides = [1, 1]} : vector<10x4xf32> to vector<10x1xf32>
    %227 = vector.broadcast %226 : vector<10x1xf32> to vector<10x32xf32>
    %228 = arith.mulf %227, %138 : vector<10x32xf32>
    %229 = arith.truncf %228 : vector<10x32xf32> to vector<10x32xbf16>
    %230 = vector.extract_strided_slice %191 {offsets = [0, 3], sizes = [10, 1], strides = [1, 1]} : vector<10x4xf32> to vector<10x1xf32>
    %231 = vector.broadcast %230 : vector<10x1xf32> to vector<10x32xf32>
    %232 = arith.mulf %231, %138 : vector<10x32xf32>
    %233 = arith.truncf %232 : vector<10x32xf32> to vector<10x32xbf16>
    %cst_66 = arith.constant dense<0.000000e+00> : vector<8x32xf32>
    %234 = tpu.matmul %21, %229, %cst_66 {dimension_numbers = #tpu.dot_dimension_numbers<[1], [0], [0], [1], [0, 0, 1, 1], [], []>} : vector<8x10xbf16>, vector<10x32xbf16>, vector<8x32xf32> -> vector<8x32xf32>
    %cst_67 = arith.constant dense<0.000000e+00> : vector<8x32xf32>
    %235 = tpu.matmul %23, %233, %cst_67 {dimension_numbers = #tpu.dot_dimension_numbers<[1], [0], [0], [1], [0, 0, 1, 1], [], []>} : vector<8x10xbf16>, vector<10x32xbf16>, vector<8x32xf32> -> vector<8x32xf32>
    %236 = arith.addf %234, %235 : vector<8x32xf32>
    %237 = arith.truncf %236 : vector<8x32xf32> to vector<8x32xbf16>
    %238 = tpu.concatenate %237, %177 in 1 : vector<8x32xbf16>, vector<8x32xbf16> -> vector<8x64xbf16>
    %cst_68 = arith.constant dense<0.000000e+00> : vector<8x128xf32>
    %239 = tpu.matmul %238, %3, %cst_68 {dimension_numbers = #tpu.dot_dimension_numbers<[1], [0], [0], [1], [0, 0, 1, 1], [], []>} : vector<8x64xbf16>, vector<64x128xbf16>, vector<8x128xf32> -> vector<8x128xf32>
    %240 = vector.broadcast %11 : vector<1x128xf32> to vector<8x128xf32>
    %241 = arith.addf %239, %240 : vector<8x128xf32>
    %242 = vector.extract_strided_slice %241 {offsets = [0, 0], sizes = [8, 32], strides = [1, 1]} : vector<8x128xf32> to vector<8x32xf32>
    %243 = arith.negf %242 : vector<8x32xf32>
    %244 = math.exp %243 : vector<8x32xf32>
    %cst_69 = arith.constant 1.000000e+00 : f32
    %245 = vector.broadcast %cst_69 : f32 to vector<8x32xf32>
    %246 = arith.addf %245, %244 : vector<8x32xf32>
    %247 = arith.divf %245, %246 : vector<8x32xf32>
    %248 = vector.extract_strided_slice %241 {offsets = [0, 32], sizes = [8, 32], strides = [1, 1]} : vector<8x128xf32> to vector<8x32xf32>
    %249 = arith.negf %248 : vector<8x32xf32>
    %250 = math.exp %249 : vector<8x32xf32>
    %cst_70 = arith.constant 1.000000e+00 : f32
    %251 = vector.broadcast %cst_70 : f32 to vector<8x32xf32>
    %252 = arith.addf %251, %250 : vector<8x32xf32>
    %253 = arith.divf %251, %252 : vector<8x32xf32>
    %254 = vector.extract_strided_slice %241 {offsets = [0, 64], sizes = [8, 32], strides = [1, 1]} : vector<8x128xf32> to vector<8x32xf32>
    %255 = vector.extract_strided_slice %241 {offsets = [0, 96], sizes = [8, 32], strides = [1, 1]} : vector<8x128xf32> to vector<8x32xf32>
    %256 = arith.mulf %247, %255 : vector<8x32xf32>
    %257 = arith.addf %254, %256 : vector<8x32xf32>
    %258 = math.tanh %257 : vector<8x32xf32>
    %cst_71 = arith.constant 1.000000e+00 : f32
    %259 = vector.broadcast %cst_71 : f32 to vector<8x32xf32>
    %260 = arith.subf %259, %253 : vector<8x32xf32>
    %261 = arith.mulf %260, %258 : vector<8x32xf32>
    %262 = arith.mulf %253, %176 : vector<8x32xf32>
    %263 = arith.addf %261, %262 : vector<8x32xf32>
    %264 = arith.truncf %263 : vector<8x32xf32> to vector<8x32xbf16>
    %265 = arith.truncf %225 : vector<10x32xf32> to vector<10x32xbf16>
    %cst_72 = arith.constant dense<0.000000e+00> : vector<10x32xf32>
    %266 = tpu.matmul %17, %264, %cst_72 {dimension_numbers = #tpu.dot_dimension_numbers<[1], [0], [0], [1], [0, 0, 1, 1], [], []>} : vector<10x8xbf16>, vector<8x32xbf16>, vector<10x32xf32> -> vector<10x32xf32>
    %cst_73 = arith.constant dense<0.000000e+00> : vector<10x32xf32>
    %267 = tpu.matmul %19, %264, %cst_73 {dimension_numbers = #tpu.dot_dimension_numbers<[1], [0], [0], [1], [0, 0, 1, 1], [], []>} : vector<10x8xbf16>, vector<8x32xbf16>, vector<10x32xf32> -> vector<10x32xf32>
    %268 = arith.truncf %266 : vector<10x32xf32> to vector<10x32xbf16>
    %269 = arith.truncf %267 : vector<10x32xf32> to vector<10x32xbf16>
    %270 = tpu.concatenate %268, %269, %265 in 1 : vector<10x32xbf16>, vector<10x32xbf16>, vector<10x32xbf16> -> vector<10x96xbf16>
    %cst_74 = arith.constant dense<0.000000e+00> : vector<10x4xf32>
    %271 = tpu.matmul %270, %5, %cst_74 {dimension_numbers = #tpu.dot_dimension_numbers<[1], [0], [0], [1], [0, 0, 1, 1], [], []>} : vector<10x96xbf16>, vector<96x4xbf16>, vector<10x4xf32> -> vector<10x4xf32>
    %272 = vector.broadcast %13 : vector<1x4xf32> to vector<10x4xf32>
    %273 = arith.addf %271, %272 : vector<10x4xf32>
    %274 = arith.negf %273 : vector<10x4xf32>
    %275 = math.exp %274 : vector<10x4xf32>
    %cst_75 = arith.constant 1.000000e+00 : f32
    %276 = vector.broadcast %cst_75 : f32 to vector<10x4xf32>
    %277 = arith.addf %276, %275 : vector<10x4xf32>
    %278 = arith.divf %276, %277 : vector<10x4xf32>
    %279 = vector.extract_strided_slice %278 {offsets = [0, 0], sizes = [10, 1], strides = [1, 1]} : vector<10x4xf32> to vector<10x1xf32>
    %280 = vector.broadcast %279 : vector<10x1xf32> to vector<10x32xf32>
    %281 = arith.mulf %280, %266 : vector<10x32xf32>
    %282 = vector.extract_strided_slice %278 {offsets = [0, 1], sizes = [10, 1], strides = [1, 1]} : vector<10x4xf32> to vector<10x1xf32>
    %283 = vector.broadcast %282 : vector<10x1xf32> to vector<10x32xf32>
    %284 = arith.mulf %283, %267 : vector<10x32xf32>
    %285 = arith.addf %281, %284 : vector<10x32xf32>
    %286 = arith.truncf %285 : vector<10x32xf32> to vector<10x32xbf16>
    %287 = tpu.concatenate %286, %265 in 1 : vector<10x32xbf16>, vector<10x32xbf16> -> vector<10x64xbf16>
    %cst_76 = arith.constant dense<0.000000e+00> : vector<10x128xf32>
    %288 = tpu.matmul %287, %4, %cst_76 {dimension_numbers = #tpu.dot_dimension_numbers<[1], [0], [0], [1], [0, 0, 1, 1], [], []>} : vector<10x64xbf16>, vector<64x128xbf16>, vector<10x128xf32> -> vector<10x128xf32>
    %289 = vector.broadcast %12 : vector<1x128xf32> to vector<10x128xf32>
    %290 = arith.addf %288, %289 : vector<10x128xf32>
    %291 = vector.extract_strided_slice %290 {offsets = [0, 0], sizes = [10, 32], strides = [1, 1]} : vector<10x128xf32> to vector<10x32xf32>
    %292 = arith.negf %291 : vector<10x32xf32>
    %293 = math.exp %292 : vector<10x32xf32>
    %cst_77 = arith.constant 1.000000e+00 : f32
    %294 = vector.broadcast %cst_77 : f32 to vector<10x32xf32>
    %295 = arith.addf %294, %293 : vector<10x32xf32>
    %296 = arith.divf %294, %295 : vector<10x32xf32>
    %297 = vector.extract_strided_slice %290 {offsets = [0, 32], sizes = [10, 32], strides = [1, 1]} : vector<10x128xf32> to vector<10x32xf32>
    %298 = arith.negf %297 : vector<10x32xf32>
    %299 = math.exp %298 : vector<10x32xf32>
    %cst_78 = arith.constant 1.000000e+00 : f32
    %300 = vector.broadcast %cst_78 : f32 to vector<10x32xf32>
    %301 = arith.addf %300, %299 : vector<10x32xf32>
    %302 = arith.divf %300, %301 : vector<10x32xf32>
    %303 = vector.extract_strided_slice %290 {offsets = [0, 64], sizes = [10, 32], strides = [1, 1]} : vector<10x128xf32> to vector<10x32xf32>
    %304 = vector.extract_strided_slice %290 {offsets = [0, 96], sizes = [10, 32], strides = [1, 1]} : vector<10x128xf32> to vector<10x32xf32>
    %305 = arith.mulf %296, %304 : vector<10x32xf32>
    %306 = arith.addf %303, %305 : vector<10x32xf32>
    %307 = math.tanh %306 : vector<10x32xf32>
    %cst_79 = arith.constant 1.000000e+00 : f32
    %308 = vector.broadcast %cst_79 : f32 to vector<10x32xf32>
    %309 = arith.subf %308, %302 : vector<10x32xf32>
    %310 = arith.mulf %309, %307 : vector<10x32xf32>
    %311 = arith.mulf %302, %225 : vector<10x32xf32>
    %312 = arith.addf %310, %311 : vector<10x32xf32>
    %313 = vector.extract_strided_slice %278 {offsets = [0, 2], sizes = [10, 1], strides = [1, 1]} : vector<10x4xf32> to vector<10x1xf32>
    %314 = vector.broadcast %313 : vector<10x1xf32> to vector<10x32xf32>
    %315 = arith.mulf %314, %225 : vector<10x32xf32>
    %316 = arith.truncf %315 : vector<10x32xf32> to vector<10x32xbf16>
    %317 = vector.extract_strided_slice %278 {offsets = [0, 3], sizes = [10, 1], strides = [1, 1]} : vector<10x4xf32> to vector<10x1xf32>
    %318 = vector.broadcast %317 : vector<10x1xf32> to vector<10x32xf32>
    %319 = arith.mulf %318, %225 : vector<10x32xf32>
    %320 = arith.truncf %319 : vector<10x32xf32> to vector<10x32xbf16>
    %cst_80 = arith.constant dense<0.000000e+00> : vector<8x32xf32>
    %321 = tpu.matmul %21, %316, %cst_80 {dimension_numbers = #tpu.dot_dimension_numbers<[1], [0], [0], [1], [0, 0, 1, 1], [], []>} : vector<8x10xbf16>, vector<10x32xbf16>, vector<8x32xf32> -> vector<8x32xf32>
    %cst_81 = arith.constant dense<0.000000e+00> : vector<8x32xf32>
    %322 = tpu.matmul %23, %320, %cst_81 {dimension_numbers = #tpu.dot_dimension_numbers<[1], [0], [0], [1], [0, 0, 1, 1], [], []>} : vector<8x10xbf16>, vector<10x32xbf16>, vector<8x32xf32> -> vector<8x32xf32>
    %323 = arith.addf %321, %322 : vector<8x32xf32>
    %324 = arith.truncf %323 : vector<8x32xf32> to vector<8x32xbf16>
    %325 = tpu.concatenate %324, %264 in 1 : vector<8x32xbf16>, vector<8x32xbf16> -> vector<8x64xbf16>
    %cst_82 = arith.constant dense<0.000000e+00> : vector<8x128xf32>
    %326 = tpu.matmul %325, %3, %cst_82 {dimension_numbers = #tpu.dot_dimension_numbers<[1], [0], [0], [1], [0, 0, 1, 1], [], []>} : vector<8x64xbf16>, vector<64x128xbf16>, vector<8x128xf32> -> vector<8x128xf32>
    %327 = vector.broadcast %11 : vector<1x128xf32> to vector<8x128xf32>
    %328 = arith.addf %326, %327 : vector<8x128xf32>
    %329 = vector.extract_strided_slice %328 {offsets = [0, 0], sizes = [8, 32], strides = [1, 1]} : vector<8x128xf32> to vector<8x32xf32>
    %330 = arith.negf %329 : vector<8x32xf32>
    %331 = math.exp %330 : vector<8x32xf32>
    %cst_83 = arith.constant 1.000000e+00 : f32
    %332 = vector.broadcast %cst_83 : f32 to vector<8x32xf32>
    %333 = arith.addf %332, %331 : vector<8x32xf32>
    %334 = arith.divf %332, %333 : vector<8x32xf32>
    %335 = vector.extract_strided_slice %328 {offsets = [0, 32], sizes = [8, 32], strides = [1, 1]} : vector<8x128xf32> to vector<8x32xf32>
    %336 = arith.negf %335 : vector<8x32xf32>
    %337 = math.exp %336 : vector<8x32xf32>
    %cst_84 = arith.constant 1.000000e+00 : f32
    %338 = vector.broadcast %cst_84 : f32 to vector<8x32xf32>
    %339 = arith.addf %338, %337 : vector<8x32xf32>
    %340 = arith.divf %338, %339 : vector<8x32xf32>
    %341 = vector.extract_strided_slice %328 {offsets = [0, 64], sizes = [8, 32], strides = [1, 1]} : vector<8x128xf32> to vector<8x32xf32>
    %342 = vector.extract_strided_slice %328 {offsets = [0, 96], sizes = [8, 32], strides = [1, 1]} : vector<8x128xf32> to vector<8x32xf32>
    %343 = arith.mulf %334, %342 : vector<8x32xf32>
    %344 = arith.addf %341, %343 : vector<8x32xf32>
    %345 = math.tanh %344 : vector<8x32xf32>
    %cst_85 = arith.constant 1.000000e+00 : f32
    %346 = vector.broadcast %cst_85 : f32 to vector<8x32xf32>
    %347 = arith.subf %346, %340 : vector<8x32xf32>
    %348 = arith.mulf %347, %345 : vector<8x32xf32>
    %349 = arith.mulf %340, %263 : vector<8x32xf32>
    %350 = arith.addf %348, %349 : vector<8x32xf32>
    %351 = arith.truncf %350 : vector<8x32xf32> to vector<8x32xbf16>
    %cst_86 = arith.constant dense<0.000000e+00> : vector<8x128xf32>
    %352 = tpu.matmul %351, %6, %cst_86 {dimension_numbers = #tpu.dot_dimension_numbers<[1], [0], [0], [1], [0, 0, 1, 1], [], []>} : vector<8x32xbf16>, vector<32x128xbf16>, vector<8x128xf32> -> vector<8x128xf32>
    %353 = vector.broadcast %14 : vector<1x128xf32> to vector<8x128xf32>
    %354 = arith.addf %352, %353 : vector<8x128xf32>
    %c0_87 = arith.constant 0 : index
    %c0_88 = arith.constant 0 : index
    %355 = vector.load %arg6[%c0_87, %c0_88] : memref<8x128xf32, #tpu.memory_space<vmem>>, vector<8x128xf32>
    tpu.vector_store %arg6[%c0_87, %c0_88], %354 {strides = array<i32>} : memref<8x128xf32, #tpu.memory_space<vmem>>, vector<8x128xf32>,
    %356 = arith.truncf %312 : vector<10x32xf32> to vector<10x32xbf16>
    %cst_89 = arith.constant dense<0.000000e+00> : vector<10x128xf32>
    %357 = tpu.matmul %356, %7, %cst_89 {dimension_numbers = #tpu.dot_dimension_numbers<[1], [0], [0], [1], [0, 0, 1, 1], [], []>} : vector<10x32xbf16>, vector<32x128xbf16>, vector<10x128xf32> -> vector<10x128xf32>
    %358 = vector.broadcast %15 : vector<1x128xf32> to vector<10x128xf32>
    %359 = arith.addf %357, %358 : vector<10x128xf32>
    %c0_90 = arith.constant 0 : index
    %c0_91 = arith.constant 0 : index
    %360 = vector.load %arg7[%c0_90, %c0_91] : memref<10x128xf32, #tpu.memory_space<vmem>>, vector<10x128xf32>
    tpu.vector_store %arg7[%c0_90, %c0_91], %359 {strides = array<i32>} : memref<10x128xf32, #tpu.memory_space<vmem>>, vector<10x128xf32>,
    return
  }
}

</mosaic_0001>

<bundles_post_ra>
// kernel: tpu_custom_call.1
= control target key start
LH: loop header
LB: loop body
LE: loop exit
PB: predicated region body
PF: predicated region fallthrough
CT: control target
= control target key end

     0   :  { %13 = vsyncpa [#allocation3], 0  ;;  %s3501_s0 = inlined_call_operand.vmem [shape: f32[8,64], index: 0, kind: input, shape index: {}]   ;;  %s3502_s1 = inlined_call_operand.vmem [shape: f32[10,32], index: 1, kind: input, shape index: {}]   ;;  %s3503_s2 = inlined_call_operand.vmem [shape: bf16[2,10,8], index: 2, kind: input, shape index: {}]   ;;  %s3504_s3 = inlined_call_operand.vmem [shape: bf16[2,8,10], index: 3, kind: input, shape index: {}]   ;;  %s3505_s4 = inlined_call_operand.hbm [shape: bf16[448,128], index: 4, kind: input, shape index: {}]   ;;  %s3506_s5 = inlined_call_operand.vmem [shape: f32[8,128], index: 5, kind: input, shape index: {}]   ;;  %s3507_s6 = inlined_call_operand.hbm [shape: f32[8,128], index: 6, kind: output, shape index: {0}]   ;;  %s3508_s7 = inlined_call_operand.hbm [shape: f32[10,128], index: 7, kind: output, shape index: {1}]  }
   0x1   :  { %14 = vsyncpa [#allocation4], 0 }
   0x2   :  { %15 = vsyncpa [#allocation7], 0  ;;  %s2857_s24 = smov [#allocation2]   ;;  %s2785_s28 = scalar_lea.hbm %s3505_s4, 3584 }
   0x3   :  { %s29_s25 = sshll.u32 %s2857_s24, 4  ;;  %p2786_p0 = scmp.ne.s32.totalorder %s3505_s4, %s2785_s28  ;;  %s30_s25 = int_to_ptr.vmem [resolvable:$true] %s29_s25 }
   0x4   :  { %p2789_p1 = scmp.lt.u32.totalorder %s2785_s28, %s3505_s4 }
   0x6   :  { %p2791_p2 = pnand %p2789_p1, %p2786_p0 }
   0x8   :  { %2794 = shalt.err (!%p2791_p2)
}
   0x9   :  { %s2795_s10 = scalar_lea.vmem %s30_s25, 3584  ;;  %p2800_p4 = scmp.lt.s32.totalorder %s30_s25, %s30_s25 }
   0xa   :  { %p2796_p3 = scmp.ne.s32.totalorder %s30_s25, %s2795_s10  ;;  %p2801_p5 = scmp.lt.s32.totalorder %s2795_s10, %s2795_s10 }
   0xc   :  { %p2802_p6 = por %p2801_p5, %p2800_p4 }
   0xe   :  { %p2803_p7 = pnand %p2802_p6, %p2796_p3 }
  0x10   :  { %2806 = shalt.err (!%p2803_p7)
}
  0x11   :  { %s2858_s11 = smov 64   ;;  %s2859_s12 = smov 4  }
  0x12   :  { %35 = dma.hbm_to_vmem [thread:$0]  %s3505_s4, 3584, %s30_s25, [#allocation3], %s2858_s11, %s2858_s11, %s2859_s12  }
  0x13   :  { %2851 = dma.done.wait [#allocation3], 3584  }
  0x14   :  { %2852 = vsyncadd [#allocation3], 4294963712  ;;  %v2860_v0 = vmov 0.0   ;;  %vm2861_vm0 = vmmov 0   ;;  %v2653_v1 = vld [vmem:[#allocation2] sm:$0xff]   ;;  %v2654_v2 = vld [vmem:[#allocation2 + $0x8] sm:$0xff]  }
  0x15   :  { %2348 = vmatprep.subr.bf16.mxu0 %v2860_v0  ;;  %2352 = vmatprep.mubr.msk.bf16.mxu0 %vm2861_vm0, %v2860_v0  ;;  %v114_v3 = vld [vmem:[%s3502_s1] sm:$0xff]  ;;  %v115_v4 = vld [vmem:[%s3502_s1 + $0x8] sm:$0x3]  ;;  %vm133_vm1 = vcmask 261120   ;;  %v2655_v6 = vld [vmem:[#allocation2 + $0x10] sm:$0xff]   ;;  %vm207_vm2 = vcmask 523264  }
  0x16   :  { %2356 = vmatprep.subr.bf16.mxu1 %v2860_v0  ;;  %2364 = vmatprep.mubr.msk.bf16.mxu1 %vm2861_vm0, %v2860_v0  ;;  %v116_v5 = vpack.c.bf16 %v115_v4, %v114_v3  ;;  %v2659_v7 = vld [vmem:[#allocation2 + $0x30] sm:$0xff]   ;;  %v2656_v8 = vld [vmem:[#allocation2 + $0x18] sm:$0xff]   ;;  %v2657_v10 = vld [vmem:[#allocation2 + $0x20] sm:$0xff]   ;;  %s2862_s26 = smov 32   ;;  %s2863_s29 = smov 96   ;;  %vm531_vm3 = vcmask 1043456  }
  0x17   :  { %2349 = vmatpush3.bf16.msra.mxu0 %v2653_v1  ;;  %2357 = vmatpush3.bf16.msra.mxu1 %v2659_v7  ;;  %v2660_v9 = vld [vmem:[#allocation2 + $0x38] sm:$0xff]   ;;  %v2658_v11 = vld [vmem:[#allocation2 + $0x28] sm:$0xff]   ;;  %v254_v12 = vld [vmem:[%s3501_s0] sm:$0xff]  ;;  %vm527_vm4 = vcmask 64512   ;;  %vm678_vm5 = vcmask 785408   ;;  %vm896_vm6 = vcmask 1044480  }
  0x18   :  { %2350 = vmatprep.subr.bf16.mxu0 %v2860_v0  ;;  %2358 = vmatprep.subr.bf16.mxu1 %v2860_v0  ;;  %v255_v13 = vpack.c.bf16 %v254_v12, %v254_v12  ;;  %v2661_v14 = vld [vmem:[#allocation2 + $0x40] sm:$0xff]   ;;  %v2662_v15 = vld [vmem:[#allocation2 + $0x48] sm:$0xff]   ;;  %v2960_v23 = vld [vmem:[#allocation2 + $0x50] sm:$0xff]   ;;  %vm892_vm7 = vcmask 80896   ;;  %s2868_s0 = smov [#allocation6]  }
  0x19   :  { %v2164_v16 = vld [vmem:[%s3506_s5] ss:$0 sm:$0xff]  ;;  %v2964_v25 = vld [vmem:[#allocation2 + $0x58] sm:$0xff]   ;;  %v2174_v26 = vld [vmem:[%s3506_s5 + $0x1] ss:$0 sm:$0xff]  ;;  %s2145_s19 = sshll.u32 %s2868_s0, 4  ;;  %s2146_s19 = int_to_ptr.vmem [resolvable:$true] %s2145_s19 }
  0x1a   :  { %v2977_v33 = vld [vmem:[#allocation2 + $0x70] sm:$0xff]   ;;  %v2981_v34 = vld [vmem:[#allocation2 + $0x78] sm:$0xff]   ;;  %v2168_v35 = vld [vmem:[%s3506_s5 + $0x2] ss:$0 sm:$0xff]  ;;  %s2807_s20 = scalar_lea.vmem %s2146_s19, 256  ;;  %p2812_p9 = scmp.lt.s32.totalorder %s2146_s19, %s2146_s19 }
  0x1b   :  { %2351 = vmatpush3.bf16.msra.mxu0 %v2654_v2  ;;  %2359 = vmatpush3.bf16.msra.mxu1 %v2660_v9  ;;  %v2994_v45 = vld [vmem:[%s3506_s5 + $0x3] ss:$0 sm:$0xff]  ;;  %v3002_v57 = vld [vmem:[%s3506_s5 + $0x4] ss:$0 sm:$0xff]  ;;  %p2808_p8 = scmp.ne.s32.totalorder %s2146_s19, %s2807_s20  ;;  %p2813_p10 = scmp.lt.s32.totalorder %s2807_s20, %s2807_s20 }
  0x1c   :  { %2368 = vmatprep.subr.bf16.mxu0 %v2860_v0  ;;  %2360 = vmatprep.subr.bf16.mxu1 %v2860_v0 }
  0x1d   :  { %p2814_p11 = por %p2813_p10, %p2812_p9 }
  0x1e   :  { %2353 = vmatmul.mubr.msk.bf16.vlgmr.msra.gmra.mrb[0].mxu0 %vm133_vm1, %v116_v5 }
  0x1f   :  { %2369 = vmatpush3.bf16.msra.mxu0 %v2655_v6  ;;  %2376 = vmatprep.mubr.msk.bf16.mxu0 %vm2861_vm0, %v2860_v0  ;;  %p2815_p12 = pnand %p2814_p11, %p2808_p8 }
  0x20   :  { %2370 = vmatprep.subr.bf16.mxu0 %v2860_v0  ;;  %2361 = vmatpush3.bf16.msra.mxu1 %v2661_v14 }
  0x21   :  { %2362 = vmatprep.subr.bf16.mxu1 %v2860_v0 }
  0x23   :  { %2371 = vmatpush3.bf16.msra.mxu0 %v2656_v8 }
  0x24   :  { %2372 = vmatprep.subr.bf16.mxu0 %v2860_v0  ;;  %2363 = vmatpush3.bf16.msra.mxu1 %v2662_v15 }
  0x25   :  { %2380 = vmatprep.subr.bf16.mxu1 %v2860_v0 }
  0x27   :  { %2373 = vmatpush3.bf16.msra.mxu0 %v2657_v10 }
  0x28   :  { %2374 = vmatprep.subr.bf16.mxu0 %v2860_v0 }
  0x2b   :  { %2375 = vmatpush3.bf16.msra.mxu0 %v2658_v11 }
  0x2c   :  { %2388 = vmatprep.subr.bf16.mxu0 %v2860_v0 }
  0x2e   :  { %2377 = vmatmul.mubr.msk.bf16.vlgmr.msra.gmra.mrb[4].mxu0 %vm207_vm2, %v255_v13 }
  0x2f   :  { %2392 = vmatprep.mubr.msk.bf16.mxu0 %vm2861_vm0, %v2860_v0  ;;  %2389 = vmatpush3.bf16.msra.mxu0 %v2977_v33 }
  0x30   :  { %2390 = vmatprep.subr.bf16.mxu0 %v2860_v0 }
  0x33   :  { %2391 = vmatpush3.bf16.msra.mxu0 %v2981_v34 }
  0x34   :  { %2402 = vmatprep.subr.bf16.mxu0 %v2860_v0 }
  0xf1   :  { %v171_v17 = vpop.f32.mrb[0].mxu0 }
  0xf2   :  { %v172_v18 = vadd.f32 %v2164_v16, %v171_v17  ;;  %v2354_v19 = vpop.f32.mrb[1].mxu0 }
  0xf3   :  { %v174_v20 = vpop.f32.mrb[2].mxu0 }
  0xf4   :  { %v175_v21 = vadd.f32 %v2164_v16, %v174_v20  ;;  %v2355_v22 = vpop.f32.mrb[3].mxu0 }
  0xf5   :  { %v3026_v22 = vld [vmem:[%s3503_s2 + $0x8] sm:$0x1f]  }
  0xf6   :  { %v178_v24 = vpack.c.bf16 %v175_v21, %v172_v18 }
  0xf8   :  { %2365 = vmatmul.mubr.msk.bf16.vlgmr.msra.gmra.mrb[0].mxu1 %vm207_vm2, %v178_v24 }
  0xf9   :  { %2381 = vmatpush3.bf16.msra.mxu1 %v2960_v23  ;;  %2384 = vmatprep.mubr.msk.bf16.mxu1 %vm2861_vm0, %v2860_v0 }
  0xfa   :  { %2382 = vmatprep.subr.bf16.mxu1 %v2860_v0 }
  0xfd   :  { %2383 = vmatpush3.bf16.msra.mxu1 %v2964_v25 }
  0xfe   :  { %2396 = vmatprep.subr.bf16.mxu1 %v2860_v0 }
 0x101   :  { %v321_v27 = vpop.f32.mrb[4].mxu0 }
 0x102   :  { %v322_v28 = vadd.f32 %v2174_v26, %v321_v27  ;;  %v2378_v29 = vpop.f32.mrb[5].mxu0 }
 0x103   :  { %v324_v30 = vpop.f32.mrb[6].mxu0 }
 0x104   :  { %v327_v31 = vpack.c.bf16 %v322_v28, %v322_v28  ;;  %v2379_v32 = vpop.f32.mrb[7].mxu0  ;;  %v3039_v28 = vld [vmem:[%s3503_s2] sm:$0x1f]  }
 0x105   :  { %v3051_v32 = vld [vmem:[#allocation2 + $0x98] sm:$0xff]  }
 0x106   :  { %2385 = vmatmul.mubr.msk.bf16.vlgmr.msra.gmra.mrb[4].mxu1 %vm133_vm1, %v327_v31  ;;  %v3048_v31 = vld [vmem:[#allocation2 + $0x90] sm:$0xff]  }
 0x107   :  { %2398 = vmatprep.mubr.msk.bf16.mxu1 %vm2861_vm0, %v2860_v0 }
 0x1cb   :  { %v245_v36 = vpop.f32.mrb[0].mxu1 }
 0x1cc   :  { %v246_v37 = vadd.f32 %v2168_v35, %v245_v36  ;;  %v2366_v38 = vpop.f32.mrb[1].mxu1 }
 0x1cd   :  { %v248_v39 = vpop.f32.mrb[2].mxu1  ;;  %v3064_v38 = vld [vmem:[#allocation2 + $0xb0] sm:$0xff]  }
 0x1ce   :  { %v249_v40 = vadd.f32 %v2168_v35, %v248_v39  ;;  %v2367_v41 = vpop.f32.mrb[3].mxu1  ;;  %v252_v42 = vmax.f32 %v246_v37, 0.0  ;;  %v3055_v35 = vld [vmem:[#allocation2 + $0xa0] sm:$0xff]   ;;  %v3060_v37 = vld [vmem:[#allocation2 + $0xa8] sm:$0xff]   ;;  %v3069_v39 = vld [vmem:[#allocation2 + $0xb8] sm:$0xff]  }
 0x1d0   :  { %v253_v43 = vmax.f32 %v249_v40, 0.0 }
 0x1d2   :  { %v410_v44 = vpack.c.bf16 %v253_v43, %v252_v42 }
 0x1d4   :  { %2393 = vmatmul.mubr.msk.bf16.vlgmr.msra.gmra.mrb[8].mxu0 %vm133_vm1, %v410_v44 }
 0x1d5   :  { %2404 = vmatprep.mubr.msk.bf16.mxu0 %vm2861_vm0, %v2860_v0 }
 0x1d9   :  { %v381_v46 = vpop.f32.mrb[4].mxu1 }
 0x1da   :  { %v382_v47 = vadd.f32 %v2994_v45, %v381_v46  ;;  %v2386_v48 = vpop.f32.mrb[5].mxu1 }
 0x1db   :  { %v384_v49 = vpop.f32.mrb[6].mxu1 }
 0x1dc   :  { %394 = vrot.lane.b32.xlu0 %v382_v47, %s2862_s26  ;;  %v2387_v50 = vpop.f32.mrb[7].mxu1  ;;  %v2184_v51 = vmul.f32 -1.442695, %v382_v47 }
 0x1de   :  { %2683 = vpow2.f32 %v2184_v51 }
 0x1e8   :  { %v2684_v52 = vpop.eup %2683 }
 0x1e9   :  { %v390_v53 = vadd.f32 1.0, %v2684_v52 }
 0x1eb   :  { %2685 = vrcp.f32 %v390_v53 }
 0x1f5   :  { %v2686_v54 = vpop.eup %2685 }
 0x1f6   :  { %v404_v9 = vsub.f32 1.0, %v2686_v54 }
 0x24e   :  { %v395_v55 = vpop.permute.xlu0 %394 }
 0x24f   :  { %v397_v56 = vmul.f32 %v2686_v54, %v395_v55 }
 0x251   :  { %399 = vrot.lane.b32.xlu0 %v397_v56, %s2858_s11 }
 0x2a7   :  { %v464_v58 = vpop.f32.mrb[8].mxu0 }
 0x2a8   :  { %v465_v59 = vadd.f32 %v3002_v57, %v464_v58  ;;  %v2394_v60 = vpop.f32.mrb[9].mxu0 }
 0x2a9   :  { %v467_v61 = vpop.f32.mrb[10].mxu0 }
 0x2aa   :  { %485 = vrot.lane.b32.xlu0 %v465_v59, %s2862_s26  ;;  %v2395_v62 = vpop.f32.mrb[11].mxu0  ;;  %v2189_v3 = vmul.f32 -1.442695, %v465_v59  ;;  %v468_v13 = vadd.f32 %v3002_v57, %v467_v61 }
 0x2ac   :  { %v2190_v17 = vmul.f32 -1.442695, %v468_v13 }
 0x2c3   :  { %v400_v63 = vpop.permute.xlu0 %399 }
 0x2c4   :  { %v402_v1 = vadd.f32 %v400_v63, %v382_v47  ;;  %v2864_v63 = vmov 3  }
 0x2c5   :  { %2631 = vset.pattern.permute.xlu0 %v2864_v63  ;;  %2632 = vset.pattern.permute.xlu1 %v2864_v63 }
 0x2c6   :  { %2687 = vtanh.f32 %v402_v1  ;;  %v3111_v1 = vld [vmem:[%s3506_s5 + $0x5] ss:$0 sm:$0xff] }
 0x2c7   :  { %2689 = vpow2.f32 %v2189_v3 }
 0x2d0   :  { %v2688_v2 = vpop.eup %2687 }
 0x2d1   :  { %406 = vrot.lane.b32.xlu1 %v2688_v2, %s2863_s29  ;;  %v2690_v4 = vpop.eup %2689 }
 0x2d2   :  { %v477_v5 = vadd.f32 1.0, %v2690_v4 }
 0x2d4   :  { %2691 = vrcp.f32 %v477_v5 }
 0x2de   :  { %v3007_v6 = vpop.eup %2691 }
 0x2df   :  { %v505_v52 = vsub.f32 1.0, %v3007_v6 }
 0x31c   :  { %v486_v7 = vpop.permute.xlu0 %485 }
 0x31d   :  { %v491_v8 = vmul.f32 %v3007_v6, %v486_v7 }
 0x31f   :  { %495 = vrot.lane.b32.xlu0 %v491_v8, %s2858_s11 }
 0x343   :  { %v407_v10 = vpop.permute.xlu1 %406 }
 0x344   :  { %v3011_v11 = vmul.f32 %v407_v10, %v404_v9 }
 0x346   :  { %v3015_v12 = vpack.c.bf16 %v3011_v11, %v3011_v11 }
 0x348   :  { %525 = vrot.lane.b32.xlu1 %v3015_v12, %s2863_s29 }
 0x34c   :  { %487 = vrot.lane.b32.xlu1 %v468_v13, %s2862_s26 }
 0x391   :  { %v496_v14 = vpop.permute.xlu0 %495 }
 0x392   :  { %v501_v15 = vadd.f32 %v496_v14, %v465_v59 }
 0x394   :  { %2693 = vtanh.f32 %v501_v15 }
 0x395   :  { %2695 = vpow2.f32 %v2190_v17 }
 0x39e   :  { %v2694_v16 = vpop.eup %2693 }
 0x39f   :  { %509 = vrot.lane.b32.xlu0 %v2694_v16, %s2863_s29  ;;  %v2696_v18 = vpop.eup %2695 }
 0x3a0   :  { %v478_v19 = vadd.f32 1.0, %v2696_v18  ;;  %v2865_v18 = vmov 2  }
 0x3a2   :  { %2697 = vrcp.f32 %v478_v19  ;;  %v2866_v19 = vmov 1  }
 0x3ac   :  { %v2698_v24 = vpop.eup %2697 }
 0x3ad   :  { %v506_v53 = vsub.f32 1.0, %v2698_v24 }
 0x3ba   :  { %v526_v20 = vpop.permute.xlu1 %525 }
 0x3bb   :  { %v533_v21 = vsel %vm531_vm3, %v526_v20, 0  ;;  %v2867_v20 = vmov 0  }
 0x3bc   :  { %2397 = vmatpush3.bf16.msra.mxu1 %v533_v21  ;;  %2403 = vmatpush3.bf16.msra.mxu0 %v533_v21  ;;  %v3120_v21 = vld [vmem:[#allocation2 + $0x80] sm:$0xff]  }
 0x3bd   :  { %2408 = vmatprep.subr.bf16.mxu1 %v2860_v0  ;;  %2424 = vmatprep.subr.bf16.mxu0 %v2860_v0 }
 0x3be   :  { %v488_v26 = vpop.permute.xlu1 %487 }
 0x3bf   :  { %v492_v27 = vmul.f32 %v2698_v24, %v488_v26  ;;  %2405 = vmatmul.mubr.msk.bf16.vlgmr.msra.gmra.mrb[12].mxu0 %vm527_vm4, %v3026_v22  ;;  %2399 = vmatmul.mubr.msk.bf16.vlgmr.msra.gmra.mrb[8].mxu1 %vm527_vm4, %v3039_v28  ;;  %v3125_v24 = vld [vmem:[#allocation2 + $0x88] sm:$0xff]  }
 0x3c0   :  { %2425 = vmatpush3.bf16.msra.mxu0 %v2977_v33  ;;  %2432 = vmatprep.mubr.msk.bf16.mxu0 %vm2861_vm0, %v2860_v0 }
 0x3c1   :  { %497 = vrot.lane.b32.xlu1 %v492_v27, %s2858_s11  ;;  %2426 = vmatprep.subr.bf16.mxu0 %v2860_v0 }
 0x3c2   :  { %2420 = vmatprep.mubr.msk.bf16.mxu1 %vm2861_vm0, %v2860_v0  ;;  %2409 = vmatpush3.bf16.msra.mxu1 %v3048_v31 }
 0x3c3   :  { %2410 = vmatprep.subr.bf16.mxu1 %v2860_v0 }
 0x3c4   :  { %2427 = vmatpush3.bf16.msra.mxu0 %v2981_v34 }
 0x3c5   :  { %2428 = vmatprep.subr.bf16.mxu0 %v2860_v0 }
 0x3c6   :  { %2411 = vmatpush3.bf16.msra.mxu1 %v3051_v32 }
 0x3c7   :  { %2412 = vmatprep.subr.bf16.mxu1 %v2860_v0 }
 0x3c8   :  { %2429 = vmatpush3.bf16.msra.mxu0 %v3120_v21 }
 0x3c9   :  { %2430 = vmatprep.subr.bf16.mxu0 %v2860_v0 }
 0x3ca   :  { %2413 = vmatpush3.bf16.msra.mxu1 %v3055_v35 }
 0x3cb   :  { %2414 = vmatprep.subr.bf16.mxu1 %v2860_v0 }
 0x3cc   :  { %2431 = vmatpush3.bf16.msra.mxu0 %v3125_v24 }
 0x3cd   :  { %2436 = vmatprep.subr.bf16.mxu0 %v2860_v0 }
 0x3ce   :  { %2415 = vmatpush3.bf16.msra.mxu1 %v3060_v37 }
 0x3cf   :  { %2416 = vmatprep.subr.bf16.mxu1 %v2860_v0 }
 0x3d2   :  { %2417 = vmatpush3.bf16.msra.mxu1 %v3064_v38 }
 0x3d3   :  { %2418 = vmatprep.subr.bf16.mxu1 %v2860_v0 }
 0x3d6   :  { %2419 = vmatpush3.bf16.msra.mxu1 %v3069_v39 }
 0x3d7   :  { %2448 = vmatprep.subr.bf16.mxu1 %v2860_v0 }
 0x411   :  { %v510_v51 = vpop.permute.xlu0 %509 }
 0x412   :  { %v3087_v55 = vmul.f32 %v510_v51, %v505_v52 }
 0x433   :  { %v498_v29 = vpop.permute.xlu1 %497 }
 0x434   :  { %v502_v30 = vadd.f32 %v498_v29, %v468_v13 }
 0x436   :  { %2699 = vtanh.f32 %v502_v30 }
 0x440   :  { %v2700_v36 = vpop.eup %2699 }
 0x441   :  { %511 = vrot.lane.b32.xlu1 %v2700_v36, %s2863_s29 }
 0x492   :  { %v3073_v40 = vpop.f32.mrb[12].mxu0  ;;  %v3079_v46 = vpop.f32.mrb[8].mxu1 }
 0x493   :  { %v2406_v41 = vpop.f32.mrb[13].mxu0  ;;  %v2400_v47 = vpop.f32.mrb[9].mxu1 }
 0x494   :  { %v3075_v42 = vpop.f32.mrb[14].mxu0  ;;  %v3082_v48 = vpop.f32.mrb[10].mxu1 }
 0x495   :  { %v626_v43 = vpack.c.bf16 %v3075_v42, %v3073_v40  ;;  %v2407_v44 = vpop.f32.mrb[15].mxu0  ;;  %v625_v49 = vpack.c.bf16 %v3082_v48, %v3079_v46  ;;  %v2401_v50 = vpop.f32.mrb[11].mxu1 }
 0x497   :  { %628 = vrot.lane.b32.xlu0 %v626_v43, %s2862_s26 }
 0x4b3   :  { %v512_v54 = vpop.permute.xlu1 %511 }
 0x4b4   :  { %v3089_v56 = vmul.f32 %v512_v54, %v506_v53 }
 0x4b6   :  { %v3093_v58 = vpack.c.bf16 %v3089_v56, %v3087_v55 }
 0x4b8   :  { %631 = vrot.lane.b32.xlu1 %v3093_v58, %s2862_s26 }
 0x509   :  { %v629_v59 = vpop.permute.xlu0 %628 }
 0x50a   :  { %v635_v60 = vsel %vm133_vm1, %v625_v49, %v629_v59 }
 0x52a   :  { %v632_v61 = vpop.permute.xlu1 %631 }
 0x52b   :  { %v637_v62 = vsel %vm207_vm2, %v635_v60, %v632_v61 }
 0x52c   :  { %2421 = vmatmul.mubr.msk.bf16.vlgmr.msra.gmra.mrb[12].mxu1 %vm678_vm5, %v637_v62 }
 0x52d   :  { %2449 = vmatpush3.bf16.msra.mxu1 %v2960_v23  ;;  %2456 = vmatprep.mubr.msk.bf16.mxu1 %vm2861_vm0, %v2860_v0 }
 0x52e   :  { %2450 = vmatprep.subr.bf16.mxu1 %v2860_v0 }
 0x531   :  { %2451 = vmatpush3.bf16.msra.mxu1 %v2964_v25 }
 0x532   :  { %2452 = vmatprep.subr.bf16.mxu1 %v2860_v0 }
 0x5ff   :  { %v715_v2 = vpop.f32.mrb[12].mxu1 }
 0x600   :  { %v716_v3 = vadd.f32 %v3111_v1, %v715_v2  ;;  %v2422_v4 = vpop.f32.mrb[13].mxu1 }
 0x601   :  { %v718_v5 = vpop.f32.mrb[14].mxu1 }
 0x602   :  { %v2203_v6 = vmul.f32 -1.442695, %v716_v3  ;;  %v719_v7 = vadd.f32 %v3111_v1, %v718_v5  ;;  %v2423_v8 = vpop.f32.mrb[15].mxu1  ;;  %v3158_v5 = vld [vmem:[#allocation2 + $0x60] sm:$0xff]  }
 0x603   :  { %2453 = vmatpush3.bf16.msra.mxu1 %v3158_v5 }
 0x604   :  { %2701 = vpow2.f32 %v2203_v6  ;;  %v2204_v9 = vmul.f32 -1.442695, %v719_v7  ;;  %v3164_v6 = vld [vmem:[%s3504_s3] sm:$0xf]  ;;  %2454 = vmatprep.subr.bf16.mxu1 %v2860_v0  ;;  %v3171_v7 = vld [vmem:[#allocation2 + $0x68] sm:$0xff]  }
 0x606   :  { %2703 = vpow2.f32 %v2204_v9 }
 0x607   :  { %2455 = vmatpush3.bf16.msra.mxu1 %v3171_v7 }
 0x608   :  { %2466 = vmatprep.subr.bf16.mxu1 %v2860_v0 }
 0x60e   :  { %v2702_v10 = vpop.eup %2701 }
 0x60f   :  { %v728_v13 = vadd.f32 1.0, %v2702_v10 }
 0x610   :  { %v2704_v14 = vpop.eup %2703 }
 0x611   :  { %2705 = vrcp.f32 %v728_v13  ;;  %v729_v15 = vadd.f32 1.0, %v2704_v14 }
 0x613   :  { %2707 = vrcp.f32 %v729_v15 }
 0x61b   :  { %v2706_v16 = vpop.eup %2705 }
 0x61c   :  { %879 = vperm.xlu0 %2631, %v2706_v16  }
 0x61d   :  { %v2708_v17 = vpop.eup %2707 }
 0x61e   :  { %883 = vperm.xlu1 %2632, %v2708_v17  }
 0x620   :  { %2634 = vset.pattern.permute.xlu0 %v2865_v18 }
 0x621   :  { %872 = vperm.xlu0 %2634, %v2708_v17  }
 0x622   :  { %2633 = vset.pattern.permute.xlu1 %v2865_v18 }
 0x623   :  { %868 = vperm.xlu1 %2633, %v2706_v16  }
 0x625   :  { %2636 = vset.pattern.permute.xlu0 %v2866_v19 }
 0x626   :  { %747 = vperm.xlu0 %2636, %v2706_v16  }
 0x627   :  { %2635 = vset.pattern.permute.xlu1 %v2867_v20 }
 0x628   :  { %736 = vperm.xlu1 %2635, %v2706_v16  }
 0x62a   :  { %2639 = vset.pattern.permute.xlu0 %v2864_v63 }
 0x62c   :  { %741 = vperm.xlu1 %2635, %v2708_v17  }
 0x630   :  { %2637 = vset.pattern.permute.xlu1 %v2866_v19 }
 0x631   :  { %751 = vperm.xlu1 %2637, %v2708_v17  }
 0x635   :  { %2638 = vset.pattern.permute.xlu1 %v2864_v63 }
 0x69b   :  { %v880_v26 = vpop.permute.xlu0 %879 }
 0x69c   :  { %v886_v29 = vmul.f32 %v880_v26, %v3087_v55 }
 0x69d   :  { %v884_v27 = vpop.permute.xlu1 %883 }
 0x69e   :  { %v887_v30 = vmul.f32 %v884_v27, %v3089_v56 }
 0x6a0   :  { %v888_v36 = vpack.c.bf16 %v887_v30, %v886_v29  ;;  %v873_v41 = vpop.permute.xlu0 %872 }
 0x6a1   :  { %v876_v44 = vmul.f32 %v873_v41, %v3089_v56 }
 0x6a2   :  { %890 = vrot.lane.b32.xlu1 %v888_v36, %s2863_s29  ;;  %v869_v43 = vpop.permute.xlu1 %868 }
 0x6a3   :  { %v875_v47 = vmul.f32 %v869_v43, %v3087_v55 }
 0x6a5   :  { %v877_v49 = vpack.c.bf16 %v876_v44, %v875_v47  ;;  %v748_v50 = vpop.permute.xlu0 %747 }
 0x6a6   :  { %v754_v52 = vmul.f32 %v748_v50, %v3073_v40 }
 0x6a7   :  { %941 = vrot.lane.b32.xlu0 %v877_v49, %s2863_s29  ;;  %v737_v51 = vpop.permute.xlu1 %736 }
 0x6a8   :  { %v744_v53 = vmul.f32 %v737_v51, %v3079_v46 }
 0x6aa   :  { %v756_v54 = vadd.f32 %v754_v52, %v744_v53 }
 0x6ab   :  { %v742_v59 = vpop.permute.xlu1 %741 }
 0x6ac   :  { %v745_v61 = vmul.f32 %v742_v59, %v3082_v48  ;;  %v3149_v48 = vld [vmem:[%s3504_s3 + $0x4] sm:$0xf] }
 0x6b0   :  { %v752_v60 = vpop.permute.xlu1 %751 }
 0x6b1   :  { %v755_v62 = vmul.f32 %v752_v60, %v3075_v42 }
 0x6b3   :  { %v757_v2 = vadd.f32 %v755_v62, %v745_v61 }
 0x6b5   :  { %v758_v3 = vpack.c.bf16 %v757_v2, %v756_v54 }
 0x6b7   :  { %v761_v4 = vsel %vm133_vm1, %v758_v3, %v3093_v58 }
 0x6b8   :  { %2433 = vmatmul.mubr.msk.bf16.vlgmr.msra.gmra.mrb[16].mxu0 %vm207_vm2, %v761_v4 }
 0x6b9   :  { %2438 = vmatprep.mubr.msk.bf16.mxu0 %vm2861_vm0, %v2860_v0 }
 0x714   :  { %v891_v40 = vpop.permute.xlu1 %890 }
 0x715   :  { %v898_v46 = vsel %vm896_vm6, %v891_v40, 0 }
 0x716   :  { %2437 = vmatpush3.bf16.msra.mxu0 %v898_v46 }
 0x717   :  { %2442 = vmatprep.subr.bf16.mxu0 %v2860_v0 }
 0x719   :  { %v942_v42 = vpop.permute.xlu0 %941  ;;  %2439 = vmatmul.mubr.msk.bf16.vlgmr.msra.gmra.mrb[20].mxu0 %vm892_vm7, %v3149_v48 }
 0x71a   :  { %v947_v58 = vsel %vm896_vm6, %v942_v42, 0  ;;  %2444 = vmatprep.mubr.msk.bf16.mxu0 %vm2861_vm0, %v2860_v0 }
 0x71b   :  { %2443 = vmatpush3.bf16.msra.mxu0 %v947_v58 }
 0x71c   :  { %2460 = vmatprep.subr.bf16.mxu0 %v2860_v0 }
 0x725   :  { %2445 = vmatmul.mubr.msk.bf16.vlgmr.msra.gmra.mrb[20].mxu0 %vm892_vm7, %v3164_v6 }
 0x726   :  { %2462 = vmatprep.mubr.msk.bf16.mxu0 %vm2861_vm0, %v2860_v0 }
 0x78b   :  { %v810_v8 = vpop.f32.mrb[16].mxu0 }
 0x78c   :  { %v2434_v9 = vpop.f32.mrb[17].mxu0  ;;  %v811_v59 = vadd.f32 %v3002_v57, %v810_v8 }
 0x78d   :  { %v813_v10 = vpop.f32.mrb[18].mxu0 }
 0x78e   :  { %v2435_v13 = vpop.f32.mrb[19].mxu0  ;;  %v2208_v60 = vmul.f32 -1.442695, %v811_v59 }
 0x78f   :  { %v814_v13 = vadd.f32 %v3002_v57, %v813_v10 }
 0x7f8   :  { %v983_v14 = vpop.f32.mrb[20].mxu0 }
 0x7f9   :  { %v989_v15 = vpack.c.bf16 %v983_v14, %v983_v14  ;;  %v2446_v16 = vpop.f32.mrb[21].mxu0 }
 0x7fa   :  { %v986_v17 = vpop.f32.mrb[22].mxu0 }
 0x7fb   :  { %v992_v26 = vsel %vm133_vm1, %v989_v15, %v3015_v12  ;;  %v2447_v27 = vpop.f32.mrb[23].mxu0 }
 0x7fc   :  { %2457 = vmatmul.mubr.msk.bf16.vlgmr.msra.gmra.mrb[16].mxu1 %vm207_vm2, %v992_v26 }
 0x7fd   :  { %2468 = vmatprep.mubr.msk.bf16.mxu1 %vm2861_vm0, %v2860_v0 }
 0x8cf   :  { %v1041_v29 = vpop.f32.mrb[16].mxu1 }
 0x8d0   :  { %v1042_v30 = vadd.f32 %v2994_v45, %v1041_v29  ;;  %v2458_v36 = vpop.f32.mrb[17].mxu1 }
 0x8d1   :  { %v1044_v41 = vpop.f32.mrb[18].mxu1 }
 0x8d2   :  { %1054 = vrot.lane.b32.xlu1 %v1042_v30, %s2862_s26  ;;  %v2459_v43 = vpop.f32.mrb[19].mxu1  ;;  %v2215_v44 = vmul.f32 -1.442695, %v1042_v30 }
 0x8d4   :  { %2709 = vpow2.f32 %v2215_v44 }
 0x8de   :  { %v2710_v47 = vpop.eup %2709 }
 0x8df   :  { %v1050_v49 = vadd.f32 1.0, %v2710_v47 }
 0x8e1   :  { %2711 = vrcp.f32 %v1050_v49 }
 0x8eb   :  { %v2712_v12 = vpop.eup %2711 }
 0x8ec   :  { %v1064_v2 = vsub.f32 1.0, %v2712_v12  ;;  %v1070_v4 = vmul.f32 %v2712_v12, %v3011_v11  ;;  %v2209_v11 = vmul.f32 -1.442695, %v814_v13 }
 0x944   :  { %v1055_v50 = vpop.permute.xlu1 %1054 }
 0x945   :  { %v1057_v51 = vmul.f32 %v2712_v12, %v1055_v50 }
 0x947   :  { %1059 = vrot.lane.b32.xlu0 %v1057_v51, %s2858_s11 }
 0x9b9   :  { %v1060_v52 = vpop.permute.xlu0 %1059 }
 0x9ba   :  { %v1062_v53 = vadd.f32 %v1060_v52, %v1042_v30 }
 0x9bc   :  { %2713 = vtanh.f32 %v1062_v53 }
 0x9bd   :  { %2715 = vpow2.f32 %v2208_v60 }
 0x9c6   :  { %v2714_v54 = vpop.eup %2713 }
 0x9c7   :  { %1066 = vrot.lane.b32.xlu1 %v2714_v54, %s2863_s29  ;;  %v2716_v61 = vpop.eup %2715 }
 0x9c8   :  { %v823_v62 = vadd.f32 1.0, %v2716_v61 }
 0x9ca   :  { %2717 = vrcp.f32 %v823_v62 }
 0x9cb   :  { %831 = vrot.lane.b32.xlu1 %v811_v59, %s2862_s26  ;;  %2719 = vpow2.f32 %v2209_v11 }
 0x9d4   :  { %v3189_v42 = vpop.eup %2717 }
 0x9d5   :  { %v2720_v14 = vpop.eup %2719  ;;  %v851_v60 = vsub.f32 1.0, %v3189_v42 }
 0x9d6   :  { %v824_v15 = vadd.f32 1.0, %v2720_v14 }
 0x9d8   :  { %2721 = vrcp.f32 %v824_v15 }
 0x9e2   :  { %v2722_v10 = vpop.eup %2721 }
 0x9e3   :  { %v852_v62 = vsub.f32 1.0, %v2722_v10 }
 0xa39   :  { %v1067_v3 = vpop.permute.xlu1 %1066 }
 0xa3a   :  { %v1069_v40 = vmul.f32 %v1067_v3, %v1064_v2  ;;  %v863_v3 = vmul.f32 %v3189_v42, %v3087_v55 }
 0xa3c   :  { %v3187_v46 = vadd.f32 %v1070_v4, %v1069_v40  ;;  %v864_v4 = vmul.f32 %v2722_v10, %v3089_v56 }
 0xa3d   :  { %v832_v58 = vpop.permute.xlu1 %831 }
 0xa3e   :  { %v837_v9 = vmul.f32 %v3189_v42, %v832_v58  ;;  %v3194_v8 = vpack.c.bf16 %v3187_v46, %v3187_v46 }
 0xa40   :  { %1075 = vrot.lane.b32.xlu0 %v3194_v8, %s2863_s29  ;;  %841 = vrot.lane.b32.xlu1 %v837_v9, %s2858_s11 }
 0xa44   :  { %833 = vrot.lane.b32.xlu0 %v814_v13, %s2862_s26 }
 0xab2   :  { %v1076_v16 = vpop.permute.xlu0 %1075  ;;  %v842_v17 = vpop.permute.xlu1 %841 }
 0xab3   :  { %v1078_v26 = vsel %vm531_vm3, %v1076_v16, 0  ;;  %v847_v27 = vadd.f32 %v842_v17, %v811_v59 }
 0xab4   :  { %2461 = vmatpush3.bf16.msra.mxu0 %v1078_v26  ;;  %2467 = vmatpush3.bf16.msra.mxu1 %v1078_v26 }
 0xab5   :  { %2723 = vtanh.f32 %v847_v27  ;;  %2472 = vmatprep.subr.bf16.mxu0 %v2860_v0  ;;  %2488 = vmatprep.subr.bf16.mxu1 %v2860_v0 }
 0xab6   :  { %v834_v29 = vpop.permute.xlu0 %833 }
 0xab7   :  { %v838_v30 = vmul.f32 %v2722_v10, %v834_v29  ;;  %2469 = vmatmul.mubr.msk.bf16.vlgmr.msra.gmra.mrb[20].mxu1 %vm527_vm4, %v3026_v22  ;;  %2463 = vmatmul.mubr.msk.bf16.vlgmr.msra.gmra.mrb[24].mxu0 %vm527_vm4, %v3039_v28 }
 0xab8   :  { %2473 = vmatpush3.bf16.msra.mxu0 %v3048_v31  ;;  %2484 = vmatprep.mubr.msk.bf16.mxu0 %vm2861_vm0, %v2860_v0 }
 0xab9   :  { %843 = vrot.lane.b32.xlu0 %v838_v30, %s2858_s11  ;;  %2474 = vmatprep.subr.bf16.mxu0 %v2860_v0 }
 0xaba   :  { %2489 = vmatpush3.bf16.msra.mxu1 %v2977_v33  ;;  %2496 = vmatprep.mubr.msk.bf16.mxu1 %vm2861_vm0, %v2860_v0 }
 0xabb   :  { %2490 = vmatprep.subr.bf16.mxu1 %v2860_v0 }
 0xabc   :  { %2475 = vmatpush3.bf16.msra.mxu0 %v3051_v32 }
 0xabd   :  { %2476 = vmatprep.subr.bf16.mxu0 %v2860_v0 }
 0xabe   :  { %2491 = vmatpush3.bf16.msra.mxu1 %v2981_v34 }
 0xabf   :  { %v2724_v36 = vpop.eup %2723  ;;  %2492 = vmatprep.subr.bf16.mxu1 %v2860_v0 }
 0xac0   :  { %855 = vrot.lane.b32.xlu1 %v2724_v36, %s2863_s29  ;;  %2477 = vmatpush3.bf16.msra.mxu0 %v3055_v35 }
 0xac1   :  { %2478 = vmatprep.subr.bf16.mxu0 %v2860_v0 }
 0xac2   :  { %2493 = vmatpush3.bf16.msra.mxu1 %v3120_v21 }
 0xac3   :  { %2494 = vmatprep.subr.bf16.mxu1 %v2860_v0 }
 0xac4   :  { %2479 = vmatpush3.bf16.msra.mxu0 %v3060_v37 }
 0xac5   :  { %2480 = vmatprep.subr.bf16.mxu0 %v2860_v0 }
 0xac6   :  { %2495 = vmatpush3.bf16.msra.mxu1 %v3125_v24 }
 0xac7   :  { %2500 = vmatprep.subr.bf16.mxu1 %v2860_v0 }
 0xac8   :  { %2481 = vmatpush3.bf16.msra.mxu0 %v3064_v38 }
 0xac9   :  { %2482 = vmatprep.subr.bf16.mxu0 %v2860_v0 }
 0xacc   :  { %2483 = vmatpush3.bf16.msra.mxu0 %v3069_v39 }
 0xacd   :  { %2512 = vmatprep.subr.bf16.mxu0 %v2860_v0 }
 0xb2b   :  { %v844_v33 = vpop.permute.xlu0 %843 }
 0xb2c   :  { %v848_v34 = vadd.f32 %v844_v33, %v814_v13 }
 0xb2e   :  { %2725 = vtanh.f32 %v848_v34 }
 0xb32   :  { %v856_v59 = vpop.permute.xlu1 %855 }
 0xb33   :  { %v861_v61 = vmul.f32 %v856_v59, %v851_v60 }
 0xb35   :  { %v3252_v58 = vadd.f32 %v863_v3, %v861_v61 }
 0xb38   :  { %v2726_v41 = vpop.eup %2725 }
 0xb39   :  { %857 = vrot.lane.b32.xlu0 %v2726_v41, %s2863_s29 }
 0xb8a   :  { %v3235_v43 = vpop.f32.mrb[20].mxu1  ;;  %v3237_v44 = vpop.f32.mrb[24].mxu0 }
 0xb8b   :  { %v2470_v47 = vpop.f32.mrb[21].mxu1  ;;  %v2464_v49 = vpop.f32.mrb[25].mxu0 }
 0xb8c   :  { %v3239_v12 = vpop.f32.mrb[22].mxu1  ;;  %v3241_v50 = vpop.f32.mrb[26].mxu0 }
 0xb8d   :  { %v1163_v51 = vpack.c.bf16 %v3239_v12, %v3235_v43  ;;  %v2471_v52 = vpop.f32.mrb[23].mxu1  ;;  %v1162_v53 = vpack.c.bf16 %v3241_v50, %v3237_v44  ;;  %v2465_v54 = vpop.f32.mrb[27].mxu0 }
 0xb8f   :  { %1165 = vrot.lane.b32.xlu1 %v1163_v51, %s2862_s26 }
 0xbab   :  { %v858_v2 = vpop.permute.xlu0 %857 }
 0xbac   :  { %v862_v40 = vmul.f32 %v858_v2, %v852_v62 }
 0xbae   :  { %v3254_v9 = vadd.f32 %v864_v4, %v862_v40 }
 0xbb0   :  { %v3258_v13 = vpack.c.bf16 %v3254_v9, %v3252_v58 }
 0xbb2   :  { %1168 = vrot.lane.b32.xlu0 %v3258_v13, %s2862_s26 }
 0xc01   :  { %v1166_v11 = vpop.permute.xlu1 %1165 }
 0xc02   :  { %v1172_v14 = vsel %vm133_vm1, %v1162_v53, %v1166_v11 }
 0xc24   :  { %v1169_v15 = vpop.permute.xlu0 %1168 }
 0xc25   :  { %v1174_v55 = vsel %vm207_vm2, %v1172_v14, %v1169_v15 }
 0xc26   :  { %2485 = vmatmul.mubr.msk.bf16.vlgmr.msra.gmra.mrb[28].mxu0 %vm678_vm5, %v1174_v55 }
 0xc27   :  { %2513 = vmatpush3.bf16.msra.mxu0 %v2960_v23  ;;  %2520 = vmatprep.mubr.msk.bf16.mxu0 %vm2861_vm0, %v2860_v0 }
 0xc28   :  { %2514 = vmatprep.subr.bf16.mxu0 %v2860_v0 }
 0xc2b   :  { %2515 = vmatpush3.bf16.msra.mxu0 %v2964_v25 }
 0xc2c   :  { %2516 = vmatprep.subr.bf16.mxu0 %v2860_v0 }
 0xc2f   :  { %2517 = vmatpush3.bf16.msra.mxu0 %v3158_v5 }
 0xc30   :  { %2518 = vmatprep.subr.bf16.mxu0 %v2860_v0 }
 0xc33   :  { %2519 = vmatpush3.bf16.msra.mxu0 %v3171_v7 }
 0xc34   :  { %2530 = vmatprep.subr.bf16.mxu0 %v2860_v0 }
 0xcf9   :  { %v1211_v56 = vpop.f32.mrb[28].mxu0 }
 0xcfa   :  { %v1212_v23 = vadd.f32 %v3111_v1, %v1211_v56  ;;  %v2486_v42 = vpop.f32.mrb[29].mxu0 }
 0xcfb   :  { %v1214_v16 = vpop.f32.mrb[30].mxu0 }
 0xcfc   :  { %v2219_v17 = vmul.f32 -1.442695, %v1212_v23  ;;  %v1215_v26 = vadd.f32 %v3111_v1, %v1214_v16  ;;  %v2487_v27 = vpop.f32.mrb[31].mxu0 }
 0xcfe   :  { %2727 = vpow2.f32 %v2219_v17  ;;  %v2220_v25 = vmul.f32 -1.442695, %v1215_v26 }
 0xd00   :  { %2729 = vpow2.f32 %v2220_v25 }
 0xd08   :  { %v2728_v10 = vpop.eup %2727 }
 0xd09   :  { %v1224_v29 = vadd.f32 1.0, %v2728_v10 }
 0xd0a   :  { %v2730_v30 = vpop.eup %2729 }
 0xd0b   :  { %2731 = vrcp.f32 %v1224_v29  ;;  %v1225_v36 = vadd.f32 1.0, %v2730_v30 }
 0xd0d   :  { %2733 = vrcp.f32 %v1225_v36 }
 0xd15   :  { %v2732_v33 = vpop.eup %2731 }
 0xd16   :  { %1363 = vperm.xlu1 %2638, %v2732_v33  }
 0xd17   :  { %v2734_v34 = vpop.eup %2733 }
 0xd18   :  { %1367 = vperm.xlu0 %2639, %v2734_v34  }
 0xd1a   :  { %2640 = vset.pattern.permute.xlu1 %v2865_v18 }
 0xd1b   :  { %1352 = vperm.xlu1 %2640, %v2732_v33  }
 0xd1c   :  { %2641 = vset.pattern.permute.xlu0 %v2867_v20 }
 0xd1d   :  { %1232 = vperm.xlu0 %2641, %v2732_v33  }
 0xd1f   :  { %1356 = vperm.xlu1 %2640, %v2734_v34  }
 0xd21   :  { %2644 = vset.pattern.permute.xlu0 %v2866_v19 }
 0xd22   :  { %1247 = vperm.xlu0 %2644, %v2734_v34  }
 0xd23   :  { %2642 = vset.pattern.permute.xlu1 %v2867_v20 }
 0xd24   :  { %1237 = vperm.xlu1 %2642, %v2734_v34  }
 0xd26   :  { %2645 = vset.pattern.permute.xlu0 %v2864_v63 }
 0xd28   :  { %2643 = vset.pattern.permute.xlu1 %v2866_v19 }
 0xd29   :  { %1243 = vperm.xlu1 %2643, %v2732_v33  }
 0xd2d   :  { %2646 = vset.pattern.permute.xlu1 %v2864_v63 }
 0xd95   :  { %v1364_v41 = vpop.permute.xlu1 %1363 }
 0xd96   :  { %v1370_v49 = vmul.f32 %v1364_v41, %v3252_v58 }
 0xd97   :  { %v1368_v47 = vpop.permute.xlu0 %1367 }
 0xd98   :  { %v1371_v51 = vmul.f32 %v1368_v47, %v3254_v9 }
 0xd9a   :  { %v1372_v52 = vpack.c.bf16 %v1371_v51, %v1370_v49  ;;  %v1353_v53 = vpop.permute.xlu1 %1352 }
 0xd9b   :  { %v1359_v60 = vmul.f32 %v1353_v53, %v3252_v58 }
 0xd9c   :  { %1374 = vrot.lane.b32.xlu1 %v1372_v52, %s2863_s29  ;;  %v1233_v54 = vpop.permute.xlu0 %1232 }
 0xd9d   :  { %v1240_v15 = vmul.f32 %v1233_v54, %v3237_v44 }
 0xd9e   :  { %v1357_v59 = vpop.permute.xlu1 %1356 }
 0xd9f   :  { %v1360_v61 = vmul.f32 %v1357_v59, %v3254_v9 }
 0xda1   :  { %v1361_v62 = vpack.c.bf16 %v1360_v61, %v1359_v60  ;;  %v1248_v2 = vpop.permute.xlu0 %1247 }
 0xda2   :  { %v1251_v4 = vmul.f32 %v1248_v2, %v3239_v12 }
 0xda3   :  { %v1238_v3 = vpop.permute.xlu1 %1237  ;;  %1420 = vrot.lane.b32.xlu1 %v1361_v62, %s2863_s29 }
 0xda4   :  { %v1241_v40 = vmul.f32 %v1238_v3, %v3241_v50 }
 0xda6   :  { %v1253_v11 = vadd.f32 %v1251_v4, %v1241_v40 }
 0xda8   :  { %v1244_v14 = vpop.permute.xlu1 %1243 }
 0xda9   :  { %v1250_v55 = vmul.f32 %v1244_v14, %v3235_v43 }
 0xdab   :  { %v1252_v56 = vadd.f32 %v1250_v55, %v1240_v15 }
 0xdad   :  { %v1254_v23 = vpack.c.bf16 %v1253_v11, %v1252_v56 }
 0xdaf   :  { %v1257_v42 = vsel %vm133_vm1, %v1254_v23, %v3258_v13 }
 0xdb0   :  { %2497 = vmatmul.mubr.msk.bf16.vlgmr.msra.gmra.mrb[24].mxu1 %vm207_vm2, %v1257_v42 }
 0xdb1   :  { %2502 = vmatprep.mubr.msk.bf16.mxu1 %vm2861_vm0, %v2860_v0 }
 0xe0e   :  { %v1375_v16 = vpop.permute.xlu1 %1374 }
 0xe0f   :  { %v1377_v12 = vsel %vm896_vm6, %v1375_v16, 0 }
 0xe10   :  { %2501 = vmatpush3.bf16.msra.mxu1 %v1377_v12 }
 0xe11   :  { %2506 = vmatprep.subr.bf16.mxu1 %v2860_v0 }
 0xe13   :  { %2503 = vmatmul.mubr.msk.bf16.vlgmr.msra.gmra.mrb[28].mxu1 %vm892_vm7, %v3149_v48 }
 0xe14   :  { %2508 = vmatprep.mubr.msk.bf16.mxu1 %vm2861_vm0, %v2860_v0 }
 0xe15   :  { %v1421_v43 = vpop.permute.xlu1 %1420 }
 0xe16   :  { %v1423_v44 = vsel %vm896_vm6, %v1421_v43, 0 }
 0xe17   :  { %2507 = vmatpush3.bf16.msra.mxu1 %v1423_v44 }
 0xe18   :  { %2524 = vmatprep.subr.bf16.mxu1 %v2860_v0 }
 0xe1f   :  { %2509 = vmatmul.mubr.msk.bf16.vlgmr.msra.gmra.mrb[28].mxu1 %vm892_vm7, %v3164_v6 }
 0xe20   :  { %2526 = vmatprep.mubr.msk.bf16.mxu1 %vm2861_vm0, %v2860_v0 }
 0xe83   :  { %v1294_v50 = vpop.f32.mrb[24].mxu1 }
 0xe84   :  { %v2498_v13 = vpop.f32.mrb[25].mxu1 }
 0xe85   :  { %v1297_v17 = vpop.f32.mrb[26].mxu1 }
 0xe86   :  { %v2499_v26 = vpop.f32.mrb[27].mxu1  ;;  %v1298_v12 = vadd.f32 %v3002_v57, %v1297_v17 }
 0xef2   :  { %v1459_v27 = vpop.f32.mrb[28].mxu1 }
 0xef3   :  { %v1465_v25 = vpack.c.bf16 %v1459_v27, %v1459_v27  ;;  %v2510_v10 = vpop.f32.mrb[29].mxu1 }
 0xef4   :  { %v1462_v29 = vpop.f32.mrb[30].mxu1  ;;  %v2779_v10 = vld [vmem:[#allocation2 + $0x70] sm:$0xff]  }
 0xef5   :  { %v1468_v30 = vsel %vm133_vm1, %v1465_v25, %v3194_v8  ;;  %v2511_v36 = vpop.f32.mrb[31].mxu1 }
 0xef6   :  { %2521 = vmatmul.mubr.msk.bf16.vlgmr.msra.gmra.mrb[32].mxu0 %vm207_vm2, %v1468_v30 }
 0xef7   :  { %2532 = vmatprep.mubr.msk.bf16.mxu0 %vm2861_vm0, %v2860_v0 }
 0xfc9   :  { %v1505_v33 = vpop.f32.mrb[32].mxu0 }
 0xfca   :  { %v1506_v34 = vadd.f32 %v2994_v45, %v1505_v33  ;;  %v2522_v41 = vpop.f32.mrb[33].mxu0  ;;  %v1295_v45 = vadd.f32 %v3002_v57, %v1294_v50 }
 0xfcb   :  { %v1508_v47 = vpop.f32.mrb[34].mxu0 }
 0xfcc   :  { %1518 = vrot.lane.b32.xlu0 %v1506_v34, %s2862_s26  ;;  %v2523_v49 = vpop.f32.mrb[35].mxu0  ;;  %v2227_v51 = vmul.f32 -1.442695, %v1506_v34  ;;  %v2222_v2 = vmul.f32 -1.442695, %v1295_v45 }
 0xfce   :  { %2735 = vpow2.f32 %v2227_v51 }
 0xfd8   :  { %v2736_v52 = vpop.eup %2735 }
 0xfd9   :  { %v1514_v53 = vadd.f32 1.0, %v2736_v52 }
 0xfdb   :  { %2737 = vrcp.f32 %v1514_v53 }
 0xfe5   :  { %v2738_v8 = vpop.eup %2737 }
 0xfe6   :  { %v1528_v40 = vsub.f32 1.0, %v2738_v8  ;;  %v1534_v14 = vmul.f32 %v2738_v8, %v3187_v46  ;;  %v2223_v46 = vmul.f32 -1.442695, %v1298_v12 }
0x103e   :  { %v1519_v54 = vpop.permute.xlu0 %1518 }
0x103f   :  { %v1521_v59 = vmul.f32 %v2738_v8, %v1519_v54 }
0x1041   :  { %1523 = vrot.lane.b32.xlu1 %v1521_v59, %s2858_s11 }
0x10b3   :  { %v1524_v60 = vpop.permute.xlu1 %1523 }
0x10b4   :  { %v1526_v61 = vadd.f32 %v1524_v60, %v1506_v34 }
0x10b6   :  { %2739 = vtanh.f32 %v1526_v61 }
0x10b7   :  { %2741 = vpow2.f32 %v2222_v2 }
0x10c0   :  { %v2740_v62 = vpop.eup %2739 }
0x10c1   :  { %1530 = vrot.lane.b32.xlu0 %v2740_v62, %s2863_s29  ;;  %v2742_v3 = vpop.eup %2741 }
0x10c2   :  { %v1307_v4 = vadd.f32 1.0, %v2742_v3  ;;  %v2782_v3 = vld [vmem:[#allocation2 + $0x58] sm:$0xff]  }
0x10c4   :  { %2743 = vrcp.f32 %v1307_v4 }
0x10c5   :  { %1315 = vrot.lane.b32.xlu0 %v1295_v45, %s2862_s26  ;;  %2745 = vpow2.f32 %v2223_v46 }
0x10ce   :  { %v3325_v56 = vpop.eup %2743 }
0x10cf   :  { %v2746_v43 = vpop.eup %2745  ;;  %v1335_v47 = vsub.f32 1.0, %v3325_v56  ;;  %v1347_v53 = vmul.f32 %v3325_v56, %v3252_v58 }
0x10d0   :  { %v1308_v44 = vadd.f32 1.0, %v2746_v43 }
0x10d2   :  { %2747 = vrcp.f32 %v1308_v44 }
0x10dc   :  { %v2748_v57 = vpop.eup %2747 }
0x10dd   :  { %v1336_v51 = vsub.f32 1.0, %v2748_v57  ;;  %v1348_v8 = vmul.f32 %v2748_v57, %v3254_v9  ;;  %v2781_v9 = vld [vmem:[#allocation2 + $0x50] sm:$0xff]  }
0x1133   :  { %v1531_v11 = vpop.permute.xlu0 %1530 }
0x1134   :  { %v1533_v15 = vmul.f32 %v1531_v11, %v1528_v40 }
0x1136   :  { %v3323_v55 = vadd.f32 %v1534_v14, %v1533_v15 }
0x1137   :  { %v1316_v23 = vpop.permute.xlu0 %1315 }
0x1138   :  { %v1321_v42 = vmul.f32 %v3325_v56, %v1316_v23  ;;  %v3330_v16 = vpack.c.bf16 %v3323_v55, %v3323_v55 }
0x113a   :  { %1539 = vrot.lane.b32.xlu1 %v3330_v16, %s2863_s29  ;;  %1325 = vrot.lane.b32.xlu0 %v1321_v42, %s2858_s11 }
0x113e   :  { %1317 = vrot.lane.b32.xlu1 %v1298_v12, %s2862_s26 }
0x11ac   :  { %v1540_v50 = vpop.permute.xlu1 %1539  ;;  %v1326_v13 = vpop.permute.xlu0 %1325 }
0x11ad   :  { %v1542_v26 = vsel %vm531_vm3, %v1540_v50, 0  ;;  %v1331_v27 = vadd.f32 %v1326_v13, %v1295_v45 }
0x11ae   :  { %2525 = vmatpush3.bf16.msra.mxu1 %v1542_v26  ;;  %2531 = vmatpush3.bf16.msra.mxu0 %v1542_v26 }
0x11af   :  { %2749 = vtanh.f32 %v1331_v27  ;;  %2536 = vmatprep.subr.bf16.mxu1 %v2860_v0  ;;  %2552 = vmatprep.subr.bf16.mxu0 %v2860_v0 }
0x11b0   :  { %v1318_v17 = vpop.permute.xlu1 %1317 }
0x11b1   :  { %v1322_v25 = vmul.f32 %v2748_v57, %v1318_v17  ;;  %2533 = vmatmul.mubr.msk.bf16.vlgmr.msra.gmra.mrb[36].mxu0 %vm527_vm4, %v3026_v22  ;;  %2527 = vmatmul.mubr.msk.bf16.vlgmr.msra.gmra.mrb[32].mxu1 %vm527_vm4, %v3039_v28  ;;  %v2780_v22 = vld [vmem:[#allocation2 + $0x78] sm:$0xff]  }
0x11b2   :  { %2537 = vmatpush3.bf16.msra.mxu1 %v3048_v31  ;;  %2548 = vmatprep.mubr.msk.bf16.mxu1 %vm2861_vm0, %v2860_v0 }
0x11b3   :  { %1327 = vrot.lane.b32.xlu1 %v1322_v25, %s2858_s11  ;;  %2538 = vmatprep.subr.bf16.mxu1 %v2860_v0 }
0x11b4   :  { %2553 = vmatpush3.bf16.msra.mxu0 %v2779_v10  ;;  %2560 = vmatprep.mubr.msk.bf16.mxu0 %vm2861_vm0, %v2860_v0 }
0x11b5   :  { %2554 = vmatprep.subr.bf16.mxu0 %v2860_v0 }
0x11b6   :  { %2539 = vmatpush3.bf16.msra.mxu1 %v3051_v32 }
0x11b7   :  { %2540 = vmatprep.subr.bf16.mxu1 %v2860_v0 }
0x11b8   :  { %2555 = vmatpush3.bf16.msra.mxu0 %v2780_v22 }
0x11b9   :  { %v2750_v28 = vpop.eup %2749  ;;  %2556 = vmatprep.subr.bf16.mxu0 %v2860_v0 }
0x11ba   :  { %1339 = vrot.lane.b32.xlu0 %v2750_v28, %s2863_s29  ;;  %2541 = vmatpush3.bf16.msra.mxu1 %v3055_v35 }
0x11bb   :  { %2542 = vmatprep.subr.bf16.mxu1 %v2860_v0 }
0x11bc   :  { %2557 = vmatpush3.bf16.msra.mxu0 %v3120_v21 }
0x11bd   :  { %2558 = vmatprep.subr.bf16.mxu0 %v2860_v0 }
0x11be   :  { %2543 = vmatpush3.bf16.msra.mxu1 %v3060_v37 }
0x11bf   :  { %2544 = vmatprep.subr.bf16.mxu1 %v2860_v0 }
0x11c0   :  { %2559 = vmatpush3.bf16.msra.mxu0 %v3125_v24 }
0x11c1   :  { %2564 = vmatprep.subr.bf16.mxu0 %v2860_v0 }
0x11c2   :  { %2545 = vmatpush3.bf16.msra.mxu1 %v3064_v38 }
0x11c3   :  { %2546 = vmatprep.subr.bf16.mxu1 %v2860_v0 }
0x11c6   :  { %2547 = vmatpush3.bf16.msra.mxu1 %v3069_v39 }
0x11c7   :  { %2576 = vmatprep.subr.bf16.mxu1 %v2860_v0 }
0x1225   :  { %v1328_v31 = vpop.permute.xlu1 %1327 }
0x1226   :  { %v1332_v32 = vadd.f32 %v1328_v31, %v1298_v12 }
0x1228   :  { %2751 = vtanh.f32 %v1332_v32 }
0x122c   :  { %v1340_v41 = vpop.permute.xlu0 %1339 }
0x122d   :  { %v1345_v49 = vmul.f32 %v1340_v41, %v1335_v47 }
0x122f   :  { %v3386_v59 = vadd.f32 %v1347_v53, %v1345_v49 }
0x1232   :  { %v2752_v35 = vpop.eup %2751 }
0x1233   :  { %1341 = vrot.lane.b32.xlu1 %v2752_v35, %s2863_s29 }
0x1284   :  { %v3369_v37 = vpop.f32.mrb[36].mxu0  ;;  %v3371_v21 = vpop.f32.mrb[32].mxu1 }
0x1285   :  { %v2534_v24 = vpop.f32.mrb[37].mxu0  ;;  %v2528_v29 = vpop.f32.mrb[33].mxu1 }
0x1286   :  { %v3373_v30 = vpop.f32.mrb[38].mxu0  ;;  %v3375_v38 = vpop.f32.mrb[34].mxu1 }
0x1287   :  { %v1627_v39 = vpack.c.bf16 %v3373_v30, %v3369_v37  ;;  %v2535_v36 = vpop.f32.mrb[39].mxu0  ;;  %v1626_v33 = vpack.c.bf16 %v3375_v38, %v3371_v21  ;;  %v2529_v34 = vpop.f32.mrb[35].mxu1 }
0x1288   :  { %v2783_v34 = vld [vmem:[%s3506_s5 + $0x4] ss:$0 sm:$0xff] }
0x1289   :  { %1629 = vrot.lane.b32.xlu0 %v1627_v39, %s2862_s26 }
0x12a5   :  { %v1342_v52 = vpop.permute.xlu1 %1341 }
0x12a6   :  { %v1346_v54 = vmul.f32 %v1342_v52, %v1336_v51 }
0x12a8   :  { %v3388_v60 = vadd.f32 %v1348_v8, %v1346_v54 }
0x12aa   :  { %v3392_v61 = vpack.c.bf16 %v3388_v60, %v3386_v59 }
0x12ac   :  { %1632 = vrot.lane.b32.xlu1 %v3392_v61, %s2862_s26 }
0x12fb   :  { %v1630_v62 = vpop.permute.xlu0 %1629 }
0x12fc   :  { %v1636_v45 = vsel %vm133_vm1, %v1626_v33, %v1630_v62 }
0x131e   :  { %v1633_v2 = vpop.permute.xlu1 %1632 }
0x131f   :  { %v1638_v58 = vsel %vm207_vm2, %v1636_v45, %v1633_v2 }
0x1320   :  { %2549 = vmatmul.mubr.msk.bf16.vlgmr.msra.gmra.mrb[36].mxu1 %vm678_vm5, %v1638_v58 }
0x1321   :  { %2577 = vmatpush3.bf16.msra.mxu1 %v2781_v9  ;;  %2584 = vmatprep.mubr.msk.bf16.mxu1 %vm2861_vm0, %v2860_v0 }
0x1322   :  { %2578 = vmatprep.subr.bf16.mxu1 %v2860_v0 }
0x1325   :  { %2579 = vmatpush3.bf16.msra.mxu1 %v2782_v3 }
0x1326   :  { %2580 = vmatprep.subr.bf16.mxu1 %v2860_v0 }
0x1329   :  { %2581 = vmatpush3.bf16.msra.mxu1 %v3158_v5 }
0x132a   :  { %2582 = vmatprep.subr.bf16.mxu1 %v2860_v0 }
0x132d   :  { %2583 = vmatpush3.bf16.msra.mxu1 %v3171_v7 }
0x132e   :  { %2596 = vmatprep.subr.bf16.mxu1 %v2860_v0 }
0x13f3   :  { %v1675_v4 = vpop.f32.mrb[36].mxu1 }
0x13f4   :  { %v1676_v40 = vadd.f32 %v3111_v1, %v1675_v4  ;;  %v2550_v11 = vpop.f32.mrb[37].mxu1 }
0x13f5   :  { %v1678_v14 = vpop.f32.mrb[38].mxu1 }
0x13f6   :  { %v2231_v15 = vmul.f32 -1.442695, %v1676_v40  ;;  %v1679_v56 = vadd.f32 %v3111_v1, %v1678_v14  ;;  %v2551_v23 = vpop.f32.mrb[39].mxu1 }
0x13f7   :  { %v2784_v23 = vld [vmem:[%s3506_s5 + $0x3] ss:$0 sm:$0xff] }
0x13f8   :  { %2753 = vpow2.f32 %v2231_v15  ;;  %v2232_v42 = vmul.f32 -1.442695, %v1679_v56 }
0x13fa   :  { %2755 = vpow2.f32 %v2232_v42 }
0x1402   :  { %v2754_v12 = vpop.eup %2753 }
0x1403   :  { %v1688_v5 = vadd.f32 1.0, %v2754_v12 }
0x1404   :  { %v2756_v46 = vpop.eup %2755 }
0x1405   :  { %2757 = vrcp.f32 %v1688_v5  ;;  %v1689_v43 = vadd.f32 1.0, %v2756_v46 }
0x1407   :  { %2759 = vrcp.f32 %v1689_v43 }
0x140f   :  { %v2758_v7 = vpop.eup %2757 }
0x1410   :  { %1827 = vperm.xlu0 %2645, %v2758_v7  }
0x1411   :  { %v2760_v44 = vpop.eup %2759 }
0x1412   :  { %1831 = vperm.xlu1 %2646, %v2760_v44  }
0x1414   :  { %2648 = vset.pattern.permute.xlu0 %v2865_v18 }
0x1415   :  { %1820 = vperm.xlu0 %2648, %v2760_v44  }
0x1416   :  { %2647 = vset.pattern.permute.xlu1 %v2865_v18 }
0x1417   :  { %1816 = vperm.xlu1 %2647, %v2758_v7  }
0x1419   :  { %2650 = vset.pattern.permute.xlu0 %v2866_v19 }
0x141a   :  { %1707 = vperm.xlu0 %2650, %v2758_v7  }
0x141b   :  { %2649 = vset.pattern.permute.xlu1 %v2867_v20 }
0x141c   :  { %1696 = vperm.xlu1 %2649, %v2758_v7  }
0x141e   :  { %2652 = vset.pattern.permute.xlu0 %v2864_v63 }
0x1420   :  { %1701 = vperm.xlu1 %2649, %v2760_v44  }
0x1424   :  { %2651 = vset.pattern.permute.xlu1 %v2866_v19 }
0x1425   :  { %1711 = vperm.xlu1 %2651, %v2760_v44  }
0x148f   :  { %v1828_v1 = vpop.permute.xlu0 %1827 }
0x1490   :  { %v1834_v13 = vmul.f32 %v1828_v1, %v3386_v59 }
0x1491   :  { %v1832_v50 = vpop.permute.xlu1 %1831 }
0x1492   :  { %v1835_v26 = vmul.f32 %v1832_v50, %v3388_v60 }
0x1494   :  { %v1836_v18 = vpack.c.bf16 %v1835_v26, %v1834_v13  ;;  %v1821_v27 = vpop.permute.xlu0 %1820 }
0x1495   :  { %v1824_v20 = vmul.f32 %v1821_v27, %v3388_v60 }
0x1496   :  { %1838 = vrot.lane.b32.xlu1 %v1836_v18, %s2863_s29  ;;  %v1817_v57 = vpop.permute.xlu1 %1816 }
0x1497   :  { %v1823_v17 = vmul.f32 %v1817_v57, %v3386_v59 }
0x1499   :  { %v1825_v63 = vpack.c.bf16 %v1824_v20, %v1823_v17  ;;  %v1708_v25 = vpop.permute.xlu0 %1707 }
0x149a   :  { %v1714_v10 = vmul.f32 %v1708_v25, %v3369_v37  ;;  %v2679_v25 = vld [vmem:[#allocation2 + $0xd0] sm:$0xff]  }
0x149b   :  { %1884 = vrot.lane.b32.xlu0 %v1825_v63, %s2863_s29  ;;  %v1697_v19 = vpop.permute.xlu1 %1696 }
0x149c   :  { %v1704_v22 = vmul.f32 %v1697_v19, %v3371_v21 }
0x149e   :  { %v1716_v28 = vadd.f32 %v1714_v10, %v1704_v22  ;;  %v2680_v10 = vld [vmem:[#allocation2 + $0xd8] sm:$0xff]   ;;  %v2681_v22 = vld [vmem:[#allocation2 + $0xc0] sm:$0xff]  }
0x149f   :  { %v1702_v31 = vpop.permute.xlu1 %1701 }
0x14a0   :  { %v1705_v35 = vmul.f32 %v1702_v31, %v3375_v38  ;;  %v2682_v31 = vld [vmem:[#allocation2 + $0xc8] sm:$0xff]  }
0x14a4   :  { %v1712_v32 = vpop.permute.xlu1 %1711 }
0x14a5   :  { %v1715_v24 = vmul.f32 %v1712_v32, %v3373_v30 }
0x14a7   :  { %v1717_v29 = vadd.f32 %v1715_v24, %v1705_v35 }
0x14a9   :  { %v1718_v39 = vpack.c.bf16 %v1717_v29, %v1716_v28 }
0x14ab   :  { %v1721_v36 = vsel %vm133_vm1, %v1718_v39, %v3392_v61 }
0x14ac   :  { %2561 = vmatmul.mubr.msk.bf16.vlgmr.msra.gmra.mrb[40].mxu0 %vm207_vm2, %v1721_v36 }
0x14ad   :  { %2566 = vmatprep.mubr.msk.bf16.mxu0 %vm2861_vm0, %v2860_v0 }
0x1508   :  { %v1839_v37 = vpop.permute.xlu1 %1838 }
0x1509   :  { %v1841_v21 = vsel %vm896_vm6, %v1839_v37, 0 }
0x150a   :  { %2565 = vmatpush3.bf16.msra.mxu0 %v1841_v21 }
0x150b   :  { %2570 = vmatprep.subr.bf16.mxu0 %v2860_v0 }
0x150d   :  { %v1885_v33 = vpop.permute.xlu0 %1884  ;;  %2567 = vmatmul.mubr.msk.bf16.vlgmr.msra.gmra.mrb[44].mxu0 %vm892_vm7, %v3149_v48 }
0x150e   :  { %v1887_v30 = vsel %vm896_vm6, %v1885_v33, 0  ;;  %2572 = vmatprep.mubr.msk.bf16.mxu0 %vm2861_vm0, %v2860_v0 }
0x150f   :  { %2571 = vmatpush3.bf16.msra.mxu0 %v1887_v30 }
0x1510   :  { %2588 = vmatprep.subr.bf16.mxu0 %v2860_v0 }
0x1519   :  { %2573 = vmatmul.mubr.msk.bf16.vlgmr.msra.gmra.mrb[44].mxu0 %vm892_vm7, %v3164_v6 }
0x151a   :  { %2592 = vmatprep.mubr.msk.bf16.mxu0 %vm2861_vm0, %v2860_v0  ;;  %2589 = vmatpush3.bf16.msra.mxu0 %v2681_v22 }
0x151b   :  { %2590 = vmatprep.subr.bf16.mxu0 %v2860_v0 }
0x151e   :  { %2591 = vmatpush3.bf16.msra.mxu0 %v2682_v31 }
0x157f   :  { %v1758_v38 = vpop.f32.mrb[40].mxu0 }
0x1580   :  { %v1759_v48 = vadd.f32 %v2783_v34, %v1758_v38  ;;  %v2562_v41 = vpop.f32.mrb[41].mxu0 }
0x1581   :  { %v1761_v47 = vpop.f32.mrb[42].mxu0 }
0x1582   :  { %v1762_v49 = vadd.f32 %v2783_v34, %v1761_v47  ;;  %1779 = vrot.lane.b32.xlu1 %v1759_v48, %s2862_s26  ;;  %v2563_v51 = vpop.f32.mrb[43].mxu0  ;;  %v2234_v52 = vmul.f32 -1.442695, %v1759_v48 }
0x1584   :  { %1781 = vrot.lane.b32.xlu0 %v1762_v49, %s2862_s26  ;;  %2761 = vpow2.f32 %v2234_v52  ;;  %v2235_v4 = vmul.f32 -1.442695, %v1762_v49 }
0x158e   :  { %v2762_v6 = vpop.eup %2761 }
0x158f   :  { %v1771_v53 = vadd.f32 1.0, %v2762_v6 }
0x1591   :  { %2763 = vrcp.f32 %v1771_v53 }
0x1592   :  { %2765 = vpow2.f32 %v2235_v4 }
0x159b   :  { %v2764_v58 = vpop.eup %2763 }
0x159c   :  { %v2766_v40 = vpop.eup %2765  ;;  %v1799_v32 = vsub.f32 1.0, %v2764_v58  ;;  %v1811_v36 = vmul.f32 %v2764_v58, %v3386_v59 }
0x159d   :  { %v1772_v14 = vadd.f32 1.0, %v2766_v40 }
0x159f   :  { %2767 = vrcp.f32 %v1772_v14 }
0x15a9   :  { %v2768_v43 = vpop.eup %2767 }
0x15aa   :  { %v1800_v29 = vsub.f32 1.0, %v2768_v43  ;;  %v1812_v37 = vmul.f32 %v2768_v43, %v3388_v60  ;;  %v2244_v60 = vld [vmem:[%s3506_s5 + $0x7] ss:$0 sm:$0xff] }
0x15ec   :  { %v1923_v8 = vpop.f32.mrb[44].mxu0 }
0x15ed   :  { %v1929_v54 = vpack.c.bf16 %v1923_v8, %v1923_v8  ;;  %v2574_v61 = vpop.f32.mrb[45].mxu0 }
0x15ee   :  { %v1926_v62 = vpop.f32.mrb[46].mxu0 }
0x15ef   :  { %v1932_v45 = vsel %vm133_vm1, %v1929_v54, %v3330_v16  ;;  %v2575_v2 = vpop.f32.mrb[47].mxu0 }
0x15f0   :  { %2585 = vmatmul.mubr.msk.bf16.vlgmr.msra.gmra.mrb[40].mxu1 %vm207_vm2, %v1932_v45 }
0x15f1   :  { %2600 = vmatprep.mubr.msk.bf16.mxu1 %vm2861_vm0, %v2860_v0  ;;  %2597 = vmatpush3.bf16.msra.mxu1 %v2679_v25 }
0x15f2   :  { %2598 = vmatprep.subr.bf16.mxu1 %v2860_v0 }
0x15f4   :  { %v1780_v9 = vpop.permute.xlu1 %1779 }
0x15f5   :  { %v1785_v3 = vmul.f32 %v2764_v58, %v1780_v9  ;;  %2599 = vmatpush3.bf16.msra.mxu1 %v2680_v10 }
0x15f6   :  { %v1782_v11 = vpop.permute.xlu0 %1781 }
0x15f7   :  { %1789 = vrot.lane.b32.xlu0 %v1785_v3, %s2858_s11  ;;  %v1786_v7 = vmul.f32 %v2768_v43, %v1782_v11 }
0x1669   :  { %v1790_v15 = vpop.permute.xlu0 %1789 }
0x166a   :  { %v1795_v56 = vadd.f32 %v1790_v15, %v1759_v48 }
0x166c   :  { %2769 = vtanh.f32 %v1795_v56 }
0x1676   :  { %v2770_v44 = vpop.eup %2769 }
0x16c3   :  { %v1969_v16 = vpop.f32.mrb[40].mxu1 }
0x16c4   :  { %v1970_v42 = vadd.f32 %v2784_v23, %v1969_v16  ;;  %v2586_v12 = vpop.f32.mrb[41].mxu1 }
0x16c5   :  { %v1972_v5 = vpop.f32.mrb[42].mxu1 }
0x16c6   :  { %1982 = vrot.lane.b32.xlu1 %v1970_v42, %s2862_s26  ;;  %v2587_v46 = vpop.f32.mrb[43].mxu1  ;;  %v2239_v1 = vmul.f32 -1.442695, %v1970_v42 }
0x16c8   :  { %2771 = vpow2.f32 %v2239_v1 }
0x16ca   :  { %1791 = vrot.lane.b32.xlu1 %v1786_v7, %s2858_s11 }
0x16ce   :  { %1803 = vrot.lane.b32.xlu1 %v2770_v44, %s2863_s29 }
0x16d2   :  { %v2772_v50 = vpop.eup %2771 }
0x16d3   :  { %v1978_v13 = vadd.f32 1.0, %v2772_v50 }
0x16d5   :  { %2773 = vrcp.f32 %v1978_v13 }
0x16df   :  { %v2774_v26 = vpop.eup %2773 }
0x16e0   :  { %v1992_v34 = vsub.f32 1.0, %v2774_v26  ;;  %v1998_v0 = vmul.f32 %v2774_v26, %v3323_v55 }
0x1738   :  { %v1983_v18 = vpop.permute.xlu1 %1982 }
0x1739   :  { %v1985_v27 = vmul.f32 %v2774_v26, %v1983_v18 }
0x173b   :  { %1987 = vrot.lane.b32.xlu0 %v1985_v27, %s2858_s11 }
0x173c   :  { %v1792_v57 = vpop.permute.xlu1 %1791 }
0x173d   :  { %v1796_v20 = vadd.f32 %v1792_v57, %v1762_v49 }
0x173f   :  { %2775 = vtanh.f32 %v1796_v20 }
0x1740   :  { %v1804_v28 = vpop.permute.xlu1 %1803 }
0x1741   :  { %v1809_v24 = vmul.f32 %v1804_v28, %v1799_v32 }
0x1743   :  { %v1813_v33 = vadd.f32 %v1811_v36, %v1809_v24 }
0x1749   :  { %v2776_v17 = vpop.eup %2775 }
0x174a   :  { %1805 = vrot.lane.b32.xlu0 %v2776_v17, %s2863_s29 }
0x17ad   :  { %v1988_v63 = vpop.permute.xlu0 %1987 }
0x17ae   :  { %v1990_v19 = vadd.f32 %v1988_v63, %v1970_v42 }
0x17b0   :  { %2777 = vtanh.f32 %v1990_v19 }
0x17ba   :  { %v2778_v35 = vpop.eup %2777 }
0x17bb   :  { %1994 = vrot.lane.b32.xlu1 %v2778_v35, %s2863_s29 }
0x17bc   :  { %v1806_v39 = vpop.permute.xlu0 %1805 }
0x17bd   :  { %v1810_v21 = vmul.f32 %v1806_v39, %v1800_v29 }
0x17bf   :  { %v1814_v30 = vadd.f32 %v1812_v37, %v1810_v21 }
0x17c1   :  { %v2064_v38 = vpack.c.bf16 %v1814_v30, %v1813_v33 }
0x17c3   :  { %2070 = vrot.lane.b32.xlu0 %v2064_v38, %s2863_s29 }
0x182d   :  { %v1995_v48 = vpop.permute.xlu1 %1994 }
0x182e   :  { %v1997_v41 = vmul.f32 %v1995_v48, %v1992_v34 }
0x1830   :  { %v1999_v47 = vadd.f32 %v1998_v0, %v1997_v41 }
0x1832   :  { %v2000_v49 = vpack.c.bf16 %v1999_v47, %v1999_v47 }
0x1834   :  { %2006 = vrot.lane.b32.xlu1 %v2000_v49, %s2863_s29 }
0x1835   :  { %v2071_v51 = vpop.permute.xlu0 %2070 }
0x1836   :  { %2601 = vmatmul.mubr.msk.bf16.vlgmr.msra.gmra.mrb[44].mxu1 %vm133_vm1, %v2071_v51 }
0x18a6   :  { %v2007_v59 = vpop.permute.xlu1 %2006 }
0x18a7   :  { %2593 = vmatmul.mubr.msk.bf16.vlgmr.msra.gmra.mrb[48].mxu0 %vm133_vm1, %v2007_v59 }
0x1909   :  { %v2121_v52 = vpop.f32.mrb[44].mxu1 }
0x190a   :  { %v2122_v6 = vadd.f32 %v2244_v60, %v2121_v52  ;;  %v2602_v55 = vpop.f32.mrb[45].mxu1 }
0x190b   :  { %v2124_v53 = vpop.f32.mrb[46].mxu1 }
0x190c   :  { %2128 = vst [vmem:[#allocation6] sm:$0xff] %v2122_v6  ;;  %v2125_v8 = vadd.f32 %v2244_v60, %v2124_v53  ;;  %v2603_v54 = vpop.f32.mrb[47].mxu1 }
0x190e   :  { %2129 = vst [vmem:[#allocation6 + $0x8] sm:$0x3] %v2125_v8 }
0x190f   :  { %2818 = shalt.err (!%p2815_p12)
}
0x1910   :  { %s2819_s23 = scalar_lea.hbm %s3508_s7, 256 }
0x1911   :  { %p2820_p13 = scmp.ne.s32.totalorder %s3508_s7, %s2819_s23  ;;  %p2823_p0 = scmp.lt.u32.totalorder %s2819_s23, %s3508_s7 }
0x1913   :  { %p2825_p1 = pnand %p2823_p0, %p2820_p13 }
0x1915   :  { %2828 = shalt.err (!%p2825_p1)
}
0x1916   :  { %s2869_s28 = smov 128   ;;  %s2870_s29 = smov 8   ;;  %v2240_v61 = vld [vmem:[%s3506_s5 + $0x6] ss:$0 sm:$0xff] }
0x1917   :  { %2151 = dma.vmem_to_hbm [thread:$0]  %s2146_s19, 256, %s3508_s7, [#allocation7], %s2869_s28, %s2869_s28, %s2870_s29  }
0x1918   :  { %s2871_s2 = smov [#allocation5]  }
0x1919   :  { %s2136_s12 = sshll.u32 %s2871_s2, 4  ;;  %s2137_s12 = int_to_ptr.vmem [resolvable:$true] %s2136_s12 }
0x191a   :  { %s2829_s13 = scalar_lea.vmem %s2137_s12, 128  ;;  %p2834_p3 = scmp.lt.s32.totalorder %s2137_s12, %s2137_s12 }
0x191b   :  { %p2830_p2 = scmp.ne.s32.totalorder %s2137_s12, %s2829_s13  ;;  %p2835_p4 = scmp.lt.s32.totalorder %s2829_s13, %s2829_s13 }
0x191d   :  { %p2836_p5 = por %p2835_p4, %p2834_p3 }
0x191f   :  { %p2837_p6 = pnand %p2836_p5, %p2830_p2 }
0x197a   :  { %v2057_v62 = vpop.f32.mrb[48].mxu0 }
0x197b   :  { %v2058_v45 = vadd.f32 %v2240_v61, %v2057_v62  ;;  %v2594_v2 = vpop.f32.mrb[49].mxu0 }
0x197c   :  { %v2060_v58 = vpop.f32.mrb[50].mxu0 }
0x197d   :  { %2063 = vst [vmem:[#allocation5] sm:$0xff] %v2058_v45  ;;  %v2595_v9 = vpop.f32.mrb[51].mxu0 }
0x197e   :  { %2840 = shalt.err (!%p2837_p6)
}
0x197f   :  { %s2841_s5 = scalar_lea.hbm %s3507_s6, 128 }
0x1980   :  { %p2842_p7 = scmp.ne.s32.totalorder %s3507_s6, %s2841_s5  ;;  %p2845_p8 = scmp.lt.u32.totalorder %s2841_s5, %s3507_s6 }
0x1982   :  { %p2847_p9 = pnand %p2845_p8, %p2842_p7 }
0x1984   :  { %2850 = shalt.err (!%p2847_p9)
}
0x1985   :  { %2139 = dma.vmem_to_hbm [thread:$0]  %s2137_s12, 128, %s3507_s6, [#allocation4]  }
0x1986   :  { %2853 = dma.done.wait [#allocation4], 128  }
0x1987   :  { %2854 = vsyncadd [#allocation4], 4294967168 }
0x1988   :  { %2855 = dma.done.wait [#allocation7], 256  }
0x1989   :  { %2856 = vsyncadd [#allocation7], 4294967040 }
0x198a   :  { %2158 = vsyncpa [#allocation3], 1 }
0x198b   :  { %2159 = vsyncpa [#allocation4], 1 }
0x198c   :  { %2160 = vsyncpa [#allocation7], 1 }

</bundles_post_ra>
